<compile_context>
chip_gen: v6e
topology: v6e:2x2x1
jax: 0.10.0
libtpu: 0.0.40
codegen_flags: <defaults>
</compile_context>

<pallas_src>
import jax
import jax.numpy as jnp
from jax import lax
from jax.experimental import pallas as pl
from jax.experimental.pallas import tpu as pltpu

# ----------------------------- configuration -------------------------------
DIM = 32
DIM_OUT = 32
NUM_HEADS = 4
HEAD_DIM = DIM_OUT // NUM_HEADS
MLP_HIDDEN = int(DIM_OUT * 4.0)
LN_EPS = 1e-6
SDPA_SCALE = 1.0 / (HEAD_DIM ** 0.5)   # F.scaled_dot_product_attention default


def _layernorm(v, w, b, eps=LN_EPS):
    mu = jnp.mean(v, axis=-1, keepdims=True)
    var = jnp.mean((v - mu) ** 2, axis=-1, keepdims=True)
    return (v - mu) * lax.rsqrt(var + eps) * w + b


def _gelu_exact(v):
    # nn.GELU default (erf-based, not tanh approximation)
    return 0.5 * v * (1.0 + lax.erf(v * 0.7071067811865476))


# ------------------------------ Pallas kernel -------------------------------
def _msblock_kernel(x_ref,
                    ln1w_ref, ln1b_ref,
                    wqkv_ref, bqkv_ref,
                    wproj_ref, bproj_ref,
                    ln2w_ref, ln2b_ref,
                    w1_ref, b1_ref,
                    w2_ref, b2_ref,
                    o_ref,
                    qkv_scr, attn_scr):
    bb, seq_len, d = x_ref.shape               # static block shape
    n_tok = bb * seq_len

    # ---- norm1 + qkv projection over the whole flattened token slab ----
    x2 = x_ref[...].reshape(n_tok, d)          # (BB*L, D)
    xn = _layernorm(x2, ln1w_ref[...], ln1b_ref[...])
    qkv = jnp.dot(xn, wqkv_ref[...], preferred_element_type=jnp.float32)
    qkv = qkv + bqkv_ref[...]                  # (BB*L, 3*D)

    # fold the SDPA scale into the q columns once per step, then stage qkv in
    # VMEM scratch so per-batch slices are cheap re-loads, not pinned vregs.
    col = lax.broadcasted_iota(jnp.int32, (1, 3 * DIM_OUT), 1)
    qkv_scr[...] = qkv * jnp.where(col < DIM_OUT, SDPA_SCALE, 1.0)

    # ---- per-batch multi-head SDPA; head outputs written to VMEM scratch ----
    def _per_batch(b, carry):
        row = pl.multiple_of(b * seq_len, seq_len)
        qkv_b = qkv_scr[pl.ds(row, seq_len), :]          # (L, 3*D)
        head_outs = []
        for h in range(NUM_HEADS):
            c0 = h * HEAD_DIM
            qh = qkv_b[:, 0 * DIM_OUT + c0: 0 * DIM_OUT + c0 + HEAD_DIM]
            kh = qkv_b[:, 1 * DIM_OUT + c0: 1 * DIM_OUT + c0 + HEAD_DIM]
            vh = qkv_b[:, 2 * DIM_OUT + c0: 2 * DIM_OUT + c0 + HEAD_DIM]
            # scores = q @ k^T without an explicit transpose of kh
            s = lax.dot_general(
                qh, kh,
                dimension_numbers=(((1,), (1,)), ((), ())),
                preferred_element_type=jnp.float32)       # (L, L)
            s = s - jnp.max(s, axis=-1, keepdims=True)
            e = jnp.exp(s)
            inv = pl.reciprocal(jnp.sum(e, axis=-1, keepdims=True),
                                approx=True)              # (L, 1), EUP slot
            head_outs.append(
                jnp.dot(e, vh, preferred_element_type=jnp.float32) * inv)
        # lane-concat the 4 (L, hd) head outputs -> (L, D); XLU is idle here
        attn_scr[pl.ds(row, seq_len), :] = jnp.concatenate(head_outs, axis=-1)
        return carry

    lax.fori_loop(0, bb, _per_batch, 0, unroll=min(2, bb))

    # ---- single output projection over the whole slab (1 MXU push) ----
    attn = jnp.dot(attn_scr[...], wproj_ref[...],
                   preferred_element_type=jnp.float32) + bproj_ref[...]

    # ---- residual 1 (drop_path = Identity); re-read shortcut from VMEM ----
    x1 = x_ref[...].reshape(n_tok, d) + attn

    # ---- norm2 + MLP over the whole slab ----
    xn2 = _layernorm(x1, ln2w_ref[...], ln2b_ref[...])
    h1 = jnp.dot(xn2, w1_ref[...], preferred_element_type=jnp.float32) + b1_ref[...]
    h1 = _gelu_exact(h1)
    h2 = jnp.dot(h1, w2_ref[...], preferred_element_type=jnp.float32) + b2_ref[...]

    # ---- residual 2 ----
    o_ref[...] = (x1 + h2).reshape(bb, seq_len, DIM_OUT).astype(o_ref.dtype)


# ------------------------------ wrapper -------------------------------------
def _pick_block_b(B, L, target_tokens=2048):
    """Largest divisor of B giving ~target_tokens tokens/step while keeping a
    >=2-step grid (>=4 when B>=4) so v7x's two TensorCores both get work."""
    bb = max(1, min(B, max(1, target_tokens // max(L, 1))))
    min_grid = 4 if B >= 4 else 2
    bb = min(bb, max(1, B // min_grid))
    while B % bb:
        bb -= 1
    return bb


def multiscale_block(x, params):
    """x: (B, H, W, DIM) float32 channel-last. Returns (B, H, W, DIM_OUT)."""
    B, H, W, D = x.shape
    assert D == DIM
    L = H * W
    xf = x.reshape(B, L, D)
    block_b = _pick_block_b(B, L)
    n_tok = block_b * L

    plist = [
        params["ln1_w"], params["ln1_b"],
        params["w_qkv"], params["b_qkv"],
        params["w_proj"], params["b_proj"],
        params["ln2_w"], params["ln2_b"],
        params["w_mlp1"], params["b_mlp1"],
        params["w_mlp2"], params["b_mlp2"],
    ]
    param_specs = [
        pl.BlockSpec(p.shape, lambda i, _n=p.ndim: (0,) * _n) for p in plist
    ]

    out = pl.pallas_call(
        _msblock_kernel,
        out_shape=jax.ShapeDtypeStruct((B, L, DIM_OUT), x.dtype),
        grid=(B // block_b,),
        in_specs=[pl.BlockSpec((block_b, L, D), lambda i: (i, 0, 0))]
                 + param_specs,
        out_specs=pl.BlockSpec((block_b, L, DIM_OUT), lambda i: (i, 0, 0)),
        scratch_shapes=[
            pltpu.VMEM((n_tok, 3 * DIM_OUT), jnp.float32),   # staged qkv
            pltpu.VMEM((n_tok, DIM_OUT), jnp.float32),       # head outputs
        ],
        compiler_params=pltpu.CompilerParams(
            # batch blocks are independent -> let v7x shard them across TCs
            dimension_semantics=("parallel",),
            vmem_limit_bytes=32 * 1024 * 1024),
    )(xf, *plist)
    return out.reshape(B, H, W, DIM_OUT)


# --------------------------- pure-JAX reference ------------------------------
def multiscale_block_ref(x, params):
    B, H, W, D = x.shape
    L = H * W
    x = x.reshape(B, L, D)
    shortcut = x
    xn = _layernorm(x, params["ln1_w"], params["ln1_b"])
    qkv = xn @ params["w_qkv"] + params["b_qkv"]
    q, k, v = jnp.split(qkv, 3, axis=-1)

    def heads(t):  # (B, L, D) -> (B, nh, L, hd)
        return t.reshape(B, L, NUM_HEADS, HEAD_DIM).transpose(0, 2, 1, 3)

    qh, kh, vh = heads(q), heads(k), heads(v)
    s = jnp.einsum("bhqd,bhkd->bhqk", qh, kh) * SDPA_SCALE
    p = jax.nn.softmax(s, axis=-1)
    o = jnp.einsum("bhqk,bhkd->bhqd", p, vh)
    o = o.transpose(0, 2, 1, 3).reshape(B, L, DIM_OUT)
    attn = o @ params["w_proj"] + params["b_proj"]
    x1 = shortcut + attn
    xn2 = _layernorm(x1, params["ln2_w"], params["ln2_b"])
    h1 = _gelu_exact(xn2 @ params["w_mlp1"] + params["b_mlp1"])
    h2 = h1 @ params["w_mlp2"] + params["b_mlp2"]
    return (x1 + h2).reshape(B, H, W, DIM_OUT)


# ------------------------------ param init ----------------------------------
def init_params(key):
    ks = jax.random.split(key, 8)
    f32 = jnp.float32

    def w(k, shape, scale=0.05):
        return (scale * jax.random.normal(k, shape)).astype(f32)

    return {
        "ln1_w": jnp.ones((1, DIM), f32),
        "ln1_b": jnp.zeros((1, DIM), f32),
        "w_qkv": w(ks[0], (DIM, 3 * DIM_OUT)),
        "b_qkv": w(ks[1], (1, 3 * DIM_OUT), 0.01),
        "w_proj": w(ks[2], (DIM_OUT, DIM_OUT)),
        "b_proj": w(ks[3], (1, DIM_OUT), 0.01),
        "ln2_w": jnp.ones((1, DIM_OUT), f32),
        "ln2_b": jnp.zeros((1, DIM_OUT), f32),
        "w_mlp1": w(ks[4], (DIM_OUT, MLP_HIDDEN)),
        "b_mlp1": w(ks[5], (1, MLP_HIDDEN), 0.01),
        "w_mlp2": w(ks[6], (MLP_HIDDEN, DIM_OUT)),
        "b_mlp2": w(ks[7], (1, DIM_OUT), 0.01),
    }


# --------------------------------- main --------------------------------------
if __name__ == "__main__":
    key = jax.random.PRNGKey(0)
    k_x, k_p = jax.random.split(key)

    B, H, W = 2, 8, 8
    x = jax.random.normal(k_x, (B, H, W, DIM), dtype=jnp.float32)
    params = init_params(k_p)

    out = multiscale_block(x, params)
    out = jax.block_until_ready(out)

    ref = multiscale_block_ref(x, params)
    assert out.shape == (B, H, W, DIM_OUT)
    # tolerance slightly loosened vs exact-divide version because the softmax
    # denominator uses the hardware approximate reciprocal (EUP vrcp).
    assert jnp.allclose(out, ref, atol=2e-3, rtol=2e-3), (
        float(jnp.max(jnp.abs(out - ref))))

    print("KERNEL_OK")
</pallas_src>

<mosaic_0001>
module attributes {stable_mosaic.version = 11 : i64} {
  func.func @_msblock_kernel(%arg0: i32, %arg1: memref<1x64x32xf32, #tpu.memory_space<vmem>>, %arg2: memref<1x32xf32, #tpu.memory_space<vmem>>, %arg3: memref<1x32xf32, #tpu.memory_space<vmem>>, %arg4: memref<32x96xf32, #tpu.memory_space<vmem>>, %arg5: memref<1x96xf32, #tpu.memory_space<vmem>>, %arg6: memref<32x32xf32, #tpu.memory_space<vmem>>, %arg7: memref<1x32xf32, #tpu.memory_space<vmem>>, %arg8: memref<1x32xf32, #tpu.memory_space<vmem>>, %arg9: memref<1x32xf32, #tpu.memory_space<vmem>>, %arg10: memref<32x128xf32, #tpu.memory_space<vmem>>, %arg11: memref<1x128xf32, #tpu.memory_space<vmem>>, %arg12: memref<128x32xf32, #tpu.memory_space<vmem>>, %arg13: memref<1x32xf32, #tpu.memory_space<vmem>>, %arg14: memref<1x64x32xf32, #tpu.memory_space<vmem>>, %arg15: memref<64x96xf32, #tpu.memory_space<vmem>>, %arg16: memref<64x32xf32, #tpu.memory_space<vmem>>) attributes {dimension_semantics = [#tpu.dimension_semantics<parallel>], iteration_bounds = array<i64: 2>, scalar_prefetch = 0 : i64, scratch_operands = 2 : i64, tpu.core_type = #tpu.core_type<tc>, window_params = [{transform_indices = @transform_0, window_bounds = array<i64: 1, 64, 32>}, {pipeline_mode = #tpu.pipeline_mode<synchronous>, transform_indices = @transform_1, window_bounds = array<i64: 1, 32>}, {pipeline_mode = #tpu.pipeline_mode<synchronous>, transform_indices = @transform_2, window_bounds = array<i64: 1, 32>}, {pipeline_mode = #tpu.pipeline_mode<synchronous>, transform_indices = @transform_3, window_bounds = array<i64: 32, 96>}, {pipeline_mode = #tpu.pipeline_mode<synchronous>, transform_indices = @transform_4, window_bounds = array<i64: 1, 96>}, {pipeline_mode = #tpu.pipeline_mode<synchronous>, transform_indices = @transform_5, window_bounds = array<i64: 32, 32>}, {pipeline_mode = #tpu.pipeline_mode<synchronous>, transform_indices = @transform_6, window_bounds = array<i64: 1, 32>}, {pipeline_mode = #tpu.pipeline_mode<synchronous>, transform_indices = @transform_7, window_bounds = array<i64: 1, 32>}, {pipeline_mode = #tpu.pipeline_mode<synchronous>, transform_indices = @transform_8, window_bounds = array<i64: 1, 32>}, {pipeline_mode = #tpu.pipeline_mode<synchronous>, transform_indices = @transform_9, window_bounds = array<i64: 32, 128>}, {pipeline_mode = #tpu.pipeline_mode<synchronous>, transform_indices = @transform_10, window_bounds = array<i64: 1, 128>}, {pipeline_mode = #tpu.pipeline_mode<synchronous>, transform_indices = @transform_11, window_bounds = array<i64: 128, 32>}, {pipeline_mode = #tpu.pipeline_mode<synchronous>, transform_indices = @transform_12, window_bounds = array<i64: 1, 32>}, {transform_indices = @transform_13, window_bounds = array<i64: 1, 64, 32>}]} {
    %c0 = arith.constant 0 : index
    %c0_0 = arith.constant 0 : index
    %c0_1 = arith.constant 0 : index
    %0 = vector.load %arg1[%c0, %c0_0, %c0_1] : memref<1x64x32xf32, #tpu.memory_space<vmem>>, vector<1x64x32xf32>
    %1 = vector.shape_cast %0 : vector<1x64x32xf32> to vector<64x32xf32>
    %c0_2 = arith.constant 0 : index
    %c0_3 = arith.constant 0 : index
    %2 = vector.load %arg2[%c0_2, %c0_3] : memref<1x32xf32, #tpu.memory_space<vmem>>, vector<1x32xf32>
    %c0_4 = arith.constant 0 : index
    %c0_5 = arith.constant 0 : index
    %3 = vector.load %arg3[%c0_4, %c0_5] : memref<1x32xf32, #tpu.memory_space<vmem>>, vector<1x32xf32>
    %cst = arith.constant dense<0.000000e+00> : vector<64xf32>
    %4 = vector.multi_reduction <add>, %1, %cst [1] : vector<64x32xf32> to vector<64xf32>
    %5 = vector.shape_cast %4 : vector<64xf32> to vector<64x1xf32>
    %cst_6 = arith.constant 3.200000e+01 : f32
    %6 = vector.broadcast %cst_6 : f32 to vector<64x1xf32>
    %7 = arith.divf %5, %6 : vector<64x1xf32>
    %8 = vector.broadcast %7 : vector<64x1xf32> to vector<64x32xf32>
    %9 = arith.subf %1, %8 : vector<64x32xf32>
    %10 = arith.mulf %9, %9 : vector<64x32xf32>
    %cst_7 = arith.constant dense<0.000000e+00> : vector<64xf32>
    %11 = vector.multi_reduction <add>, %10, %cst_7 [1] : vector<64x32xf32> to vector<64xf32>
    %12 = vector.shape_cast %11 : vector<64xf32> to vector<64x1xf32>
    %cst_8 = arith.constant 3.200000e+01 : f32
    %13 = vector.broadcast %cst_8 : f32 to vector<64x1xf32>
    %14 = arith.divf %12, %13 : vector<64x1xf32>
    %15 = vector.broadcast %7 : vector<64x1xf32> to vector<64x32xf32>
    %16 = arith.subf %1, %15 : vector<64x32xf32>
    %cst_9 = arith.constant 9.99999997E-7 : f32
    %17 = vector.broadcast %cst_9 : f32 to vector<64x1xf32>
    %18 = arith.addf %14, %17 : vector<64x1xf32>
    %19 = math.rsqrt %18 : vector<64x1xf32>
    %20 = vector.broadcast %19 : vector<64x1xf32> to vector<64x32xf32>
    %21 = arith.mulf %16, %20 : vector<64x32xf32>
    %22 = vector.broadcast %2 : vector<1x32xf32> to vector<64x32xf32>
    %23 = arith.mulf %21, %22 : vector<64x32xf32>
    %24 = vector.broadcast %3 : vector<1x32xf32> to vector<64x32xf32>
    %25 = arith.addf %23, %24 : vector<64x32xf32>
    %c0_10 = arith.constant 0 : index
    %c0_11 = arith.constant 0 : index
    %26 = vector.load %arg4[%c0_10, %c0_11] : memref<32x96xf32, #tpu.memory_space<vmem>>, vector<32x96xf32>
    %cst_12 = arith.constant dense<0.000000e+00> : vector<64x96xf32>
    %27 = tpu.matmul %25, %26, %cst_12 {dimension_numbers = #tpu.dot_dimension_numbers<[1], [0], [0], [1], [0, 0, 1, 1], [], []>} : vector<64x32xf32>, vector<32x96xf32>, vector<64x96xf32> -> vector<64x96xf32>
    %c0_13 = arith.constant 0 : index
    %c0_14 = arith.constant 0 : index
    %28 = vector.load %arg5[%c0_13, %c0_14] : memref<1x96xf32, #tpu.memory_space<vmem>>, vector<1x96xf32>
    %29 = vector.broadcast %28 : vector<1x96xf32> to vector<64x96xf32>
    %30 = arith.addf %27, %29 : vector<64x96xf32>
    %31 = tpu.iota {dimensions = array<i32: 1>} : vector<1x96xi32>
    %c32_i32 = arith.constant 32 : i32
    %32 = vector.broadcast %c32_i32 : i32 to vector<1x96xi32>
    %33 = arith.cmpi slt, %31, %32 : vector<1x96xi32>
    %cst_15 = arith.constant 0.353553385 : f32
    %cst_16 = arith.constant 1.000000e+00 : f32
    %34 = vector.broadcast %cst_15 : f32 to vector<1x96xf32>
    %35 = vector.broadcast %cst_16 : f32 to vector<1x96xf32>
    %36 = arith.select %33, %34, %35 : vector<1x96xi1>, vector<1x96xf32>
    %37 = vector.broadcast %36 : vector<1x96xf32> to vector<64x96xf32>
    %38 = arith.mulf %30, %37 : vector<64x96xf32>
    %c0_17 = arith.constant 0 : index
    %c0_18 = arith.constant 0 : index
    %39 = vector.load %arg15[%c0_17, %c0_18] : memref<64x96xf32, #tpu.memory_space<vmem>>, vector<64x96xf32>
    tpu.vector_store %arg15[%c0_17, %c0_18], %38 {strides = array<i32>} : memref<64x96xf32, #tpu.memory_space<vmem>>, vector<64x96xf32>,
    %c0_i32 = arith.constant 0 : i32
    %c64_i32 = arith.constant 64 : i32
    %40 = arith.muli %c0_i32, %c64_i32 : i32
    %41 = tpu.assume_multiple %40, 64 : i32
    %42 = arith.index_cast %41 : i32 to index
    %c0_19 = arith.constant 0 : index
    %43 = vector.load %arg15[%42, %c0_19] : memref<64x96xf32, #tpu.memory_space<vmem>>, vector<64x96xf32>
    %44 = vector.extract_strided_slice %43 {offsets = [0, 0], sizes = [64, 8], strides = [1, 1]} : vector<64x96xf32> to vector<64x8xf32>
    %45 = vector.extract_strided_slice %43 {offsets = [0, 32], sizes = [64, 8], strides = [1, 1]} : vector<64x96xf32> to vector<64x8xf32>
    %46 = vector.extract_strided_slice %43 {offsets = [0, 64], sizes = [64, 8], strides = [1, 1]} : vector<64x96xf32> to vector<64x8xf32>
    %cst_20 = arith.constant dense<0.000000e+00> : vector<64x64xf32>
    %47 = tpu.matmul %44, %45, %cst_20 {dimension_numbers = #tpu.dot_dimension_numbers<[1], [1], [0], [0], [0, 0, 1, 0], [], []>} : vector<64x8xf32>, vector<64x8xf32>, vector<64x64xf32> -> vector<64x64xf32>
    %cst_21 = arith.constant dense<0xFF800000> : vector<64xf32>
    %48 = vector.multi_reduction <maximumf>, %47, %cst_21 [1] : vector<64x64xf32> to vector<64xf32>
    %49 = vector.shape_cast %48 : vector<64xf32> to vector<64x1xf32>
    %50 = vector.broadcast %49 : vector<64x1xf32> to vector<64x64xf32>
    %51 = arith.subf %47, %50 : vector<64x64xf32>
    %52 = math.exp %51 : vector<64x64xf32>
    %cst_22 = arith.constant dense<0.000000e+00> : vector<64xf32>
    %53 = vector.multi_reduction <add>, %52, %cst_22 [1] : vector<64x64xf32> to vector<64xf32>
    %54 = vector.shape_cast %53 : vector<64xf32> to vector<64x1xf32>
    %55 = tpu.reciprocal %54 {approx = true} : vector<64x1xf32> -> vector<64x1xf32>
    %cst_23 = arith.constant dense<0.000000e+00> : vector<64x8xf32>
    %56 = tpu.matmul %52, %46, %cst_23 {dimension_numbers = #tpu.dot_dimension_numbers<[1], [0], [0], [1], [0, 0, 1, 1], [], []>} : vector<64x64xf32>, vector<64x8xf32>, vector<64x8xf32> -> vector<64x8xf32>
    %57 = vector.broadcast %55 : vector<64x1xf32> to vector<64x8xf32>
    %58 = arith.mulf %56, %57 : vector<64x8xf32>
    %59 = vector.extract_strided_slice %43 {offsets = [0, 8], sizes = [64, 8], strides = [1, 1]} : vector<64x96xf32> to vector<64x8xf32>
    %60 = vector.extract_strided_slice %43 {offsets = [0, 40], sizes = [64, 8], strides = [1, 1]} : vector<64x96xf32> to vector<64x8xf32>
    %61 = vector.extract_strided_slice %43 {offsets = [0, 72], sizes = [64, 8], strides = [1, 1]} : vector<64x96xf32> to vector<64x8xf32>
    %cst_24 = arith.constant dense<0.000000e+00> : vector<64x64xf32>
    %62 = tpu.matmul %59, %60, %cst_24 {dimension_numbers = #tpu.dot_dimension_numbers<[1], [1], [0], [0], [0, 0, 1, 0], [], []>} : vector<64x8xf32>, vector<64x8xf32>, vector<64x64xf32> -> vector<64x64xf32>
    %cst_25 = arith.constant dense<0xFF800000> : vector<64xf32>
    %63 = vector.multi_reduction <maximumf>, %62, %cst_25 [1] : vector<64x64xf32> to vector<64xf32>
    %64 = vector.shape_cast %63 : vector<64xf32> to vector<64x1xf32>
    %65 = vector.broadcast %64 : vector<64x1xf32> to vector<64x64xf32>
    %66 = arith.subf %62, %65 : vector<64x64xf32>
    %67 = math.exp %66 : vector<64x64xf32>
    %cst_26 = arith.constant dense<0.000000e+00> : vector<64xf32>
    %68 = vector.multi_reduction <add>, %67, %cst_26 [1] : vector<64x64xf32> to vector<64xf32>
    %69 = vector.shape_cast %68 : vector<64xf32> to vector<64x1xf32>
    %70 = tpu.reciprocal %69 {approx = true} : vector<64x1xf32> -> vector<64x1xf32>
    %cst_27 = arith.constant dense<0.000000e+00> : vector<64x8xf32>
    %71 = tpu.matmul %67, %61, %cst_27 {dimension_numbers = #tpu.dot_dimension_numbers<[1], [0], [0], [1], [0, 0, 1, 1], [], []>} : vector<64x64xf32>, vector<64x8xf32>, vector<64x8xf32> -> vector<64x8xf32>
    %72 = vector.broadcast %70 : vector<64x1xf32> to vector<64x8xf32>
    %73 = arith.mulf %71, %72 : vector<64x8xf32>
    %74 = vector.extract_strided_slice %43 {offsets = [0, 16], sizes = [64, 8], strides = [1, 1]} : vector<64x96xf32> to vector<64x8xf32>
    %75 = vector.extract_strided_slice %43 {offsets = [0, 48], sizes = [64, 8], strides = [1, 1]} : vector<64x96xf32> to vector<64x8xf32>
    %76 = vector.extract_strided_slice %43 {offsets = [0, 80], sizes = [64, 8], strides = [1, 1]} : vector<64x96xf32> to vector<64x8xf32>
    %cst_28 = arith.constant dense<0.000000e+00> : vector<64x64xf32>
    %77 = tpu.matmul %74, %75, %cst_28 {dimension_numbers = #tpu.dot_dimension_numbers<[1], [1], [0], [0], [0, 0, 1, 0], [], []>} : vector<64x8xf32>, vector<64x8xf32>, vector<64x64xf32> -> vector<64x64xf32>
    %cst_29 = arith.constant dense<0xFF800000> : vector<64xf32>
    %78 = vector.multi_reduction <maximumf>, %77, %cst_29 [1] : vector<64x64xf32> to vector<64xf32>
    %79 = vector.shape_cast %78 : vector<64xf32> to vector<64x1xf32>
    %80 = vector.broadcast %79 : vector<64x1xf32> to vector<64x64xf32>
    %81 = arith.subf %77, %80 : vector<64x64xf32>
    %82 = math.exp %81 : vector<64x64xf32>
    %cst_30 = arith.constant dense<0.000000e+00> : vector<64xf32>
    %83 = vector.multi_reduction <add>, %82, %cst_30 [1] : vector<64x64xf32> to vector<64xf32>
    %84 = vector.shape_cast %83 : vector<64xf32> to vector<64x1xf32>
    %85 = tpu.reciprocal %84 {approx = true} : vector<64x1xf32> -> vector<64x1xf32>
    %cst_31 = arith.constant dense<0.000000e+00> : vector<64x8xf32>
    %86 = tpu.matmul %82, %76, %cst_31 {dimension_numbers = #tpu.dot_dimension_numbers<[1], [0], [0], [1], [0, 0, 1, 1], [], []>} : vector<64x64xf32>, vector<64x8xf32>, vector<64x8xf32> -> vector<64x8xf32>
    %87 = vector.broadcast %85 : vector<64x1xf32> to vector<64x8xf32>
    %88 = arith.mulf %86, %87 : vector<64x8xf32>
    %89 = vector.extract_strided_slice %43 {offsets = [0, 24], sizes = [64, 8], strides = [1, 1]} : vector<64x96xf32> to vector<64x8xf32>
    %90 = vector.extract_strided_slice %43 {offsets = [0, 56], sizes = [64, 8], strides = [1, 1]} : vector<64x96xf32> to vector<64x8xf32>
    %91 = vector.extract_strided_slice %43 {offsets = [0, 88], sizes = [64, 8], strides = [1, 1]} : vector<64x96xf32> to vector<64x8xf32>
    %cst_32 = arith.constant dense<0.000000e+00> : vector<64x64xf32>
    %92 = tpu.matmul %89, %90, %cst_32 {dimension_numbers = #tpu.dot_dimension_numbers<[1], [1], [0], [0], [0, 0, 1, 0], [], []>} : vector<64x8xf32>, vector<64x8xf32>, vector<64x64xf32> -> vector<64x64xf32>
    %cst_33 = arith.constant dense<0xFF800000> : vector<64xf32>
    %93 = vector.multi_reduction <maximumf>, %92, %cst_33 [1] : vector<64x64xf32> to vector<64xf32>
    %94 = vector.shape_cast %93 : vector<64xf32> to vector<64x1xf32>
    %95 = vector.broadcast %94 : vector<64x1xf32> to vector<64x64xf32>
    %96 = arith.subf %92, %95 : vector<64x64xf32>
    %97 = math.exp %96 : vector<64x64xf32>
    %cst_34 = arith.constant dense<0.000000e+00> : vector<64xf32>
    %98 = vector.multi_reduction <add>, %97, %cst_34 [1] : vector<64x64xf32> to vector<64xf32>
    %99 = vector.shape_cast %98 : vector<64xf32> to vector<64x1xf32>
    %100 = tpu.reciprocal %99 {approx = true} : vector<64x1xf32> -> vector<64x1xf32>
    %cst_35 = arith.constant dense<0.000000e+00> : vector<64x8xf32>
    %101 = tpu.matmul %97, %91, %cst_35 {dimension_numbers = #tpu.dot_dimension_numbers<[1], [0], [0], [1], [0, 0, 1, 1], [], []>} : vector<64x64xf32>, vector<64x8xf32>, vector<64x8xf32> -> vector<64x8xf32>
    %102 = vector.broadcast %100 : vector<64x1xf32> to vector<64x8xf32>
    %103 = arith.mulf %101, %102 : vector<64x8xf32>
    %104 = tpu.concatenate %58, %73, %88, %103 in 1 : vector<64x8xf32>, vector<64x8xf32>, vector<64x8xf32>, vector<64x8xf32> -> vector<64x32xf32>
    %105 = arith.index_cast %41 : i32 to index
    %c0_36 = arith.constant 0 : index
    %106 = vector.load %arg16[%105, %c0_36] : memref<64x32xf32, #tpu.memory_space<vmem>>, vector<64x32xf32>
    tpu.vector_store %arg16[%105, %c0_36], %104 {strides = array<i32>} : memref<64x32xf32, #tpu.memory_space<vmem>>, vector<64x32xf32>,
    %c1_i32 = arith.constant 1 : i32
    %c0_37 = arith.constant 0 : index
    %c0_38 = arith.constant 0 : index
    %107 = vector.load %arg16[%c0_37, %c0_38] : memref<64x32xf32, #tpu.memory_space<vmem>>, vector<64x32xf32>
    %c0_39 = arith.constant 0 : index
    %c0_40 = arith.constant 0 : index
    %108 = vector.load %arg6[%c0_39, %c0_40] : memref<32x32xf32, #tpu.memory_space<vmem>>, vector<32x32xf32>
    %cst_41 = arith.constant dense<0.000000e+00> : vector<64x32xf32>
    %109 = tpu.matmul %107, %108, %cst_41 {dimension_numbers = #tpu.dot_dimension_numbers<[1], [0], [0], [1], [0, 0, 1, 1], [], []>} : vector<64x32xf32>, vector<32x32xf32>, vector<64x32xf32> -> vector<64x32xf32>
    %c0_42 = arith.constant 0 : index
    %c0_43 = arith.constant 0 : index
    %110 = vector.load %arg7[%c0_42, %c0_43] : memref<1x32xf32, #tpu.memory_space<vmem>>, vector<1x32xf32>
    %111 = vector.broadcast %110 : vector<1x32xf32> to vector<64x32xf32>
    %112 = arith.addf %109, %111 : vector<64x32xf32>
    %c0_44 = arith.constant 0 : index
    %c0_45 = arith.constant 0 : index
    %c0_46 = arith.constant 0 : index
    %113 = vector.load %arg1[%c0_44, %c0_45, %c0_46] : memref<1x64x32xf32, #tpu.memory_space<vmem>>, vector<1x64x32xf32>
    %114 = vector.shape_cast %113 : vector<1x64x32xf32> to vector<64x32xf32>
    %115 = arith.addf %114, %112 : vector<64x32xf32>
    %c0_47 = arith.constant 0 : index
    %c0_48 = arith.constant 0 : index
    %116 = vector.load %arg8[%c0_47, %c0_48] : memref<1x32xf32, #tpu.memory_space<vmem>>, vector<1x32xf32>
    %c0_49 = arith.constant 0 : index
    %c0_50 = arith.constant 0 : index
    %117 = vector.load %arg9[%c0_49, %c0_50] : memref<1x32xf32, #tpu.memory_space<vmem>>, vector<1x32xf32>
    %cst_51 = arith.constant dense<0.000000e+00> : vector<64xf32>
    %118 = vector.multi_reduction <add>, %115, %cst_51 [1] : vector<64x32xf32> to vector<64xf32>
    %119 = vector.shape_cast %118 : vector<64xf32> to vector<64x1xf32>
    %cst_52 = arith.constant 3.200000e+01 : f32
    %120 = vector.broadcast %cst_52 : f32 to vector<64x1xf32>
    %121 = arith.divf %119, %120 : vector<64x1xf32>
    %122 = vector.broadcast %121 : vector<64x1xf32> to vector<64x32xf32>
    %123 = arith.subf %115, %122 : vector<64x32xf32>
    %124 = arith.mulf %123, %123 : vector<64x32xf32>
    %cst_53 = arith.constant dense<0.000000e+00> : vector<64xf32>
    %125 = vector.multi_reduction <add>, %124, %cst_53 [1] : vector<64x32xf32> to vector<64xf32>
    %126 = vector.shape_cast %125 : vector<64xf32> to vector<64x1xf32>
    %cst_54 = arith.constant 3.200000e+01 : f32
    %127 = vector.broadcast %cst_54 : f32 to vector<64x1xf32>
    %128 = arith.divf %126, %127 : vector<64x1xf32>
    %129 = vector.broadcast %121 : vector<64x1xf32> to vector<64x32xf32>
    %130 = arith.subf %115, %129 : vector<64x32xf32>
    %cst_55 = arith.constant 9.99999997E-7 : f32
    %131 = vector.broadcast %cst_55 : f32 to vector<64x1xf32>
    %132 = arith.addf %128, %131 : vector<64x1xf32>
    %133 = math.rsqrt %132 : vector<64x1xf32>
    %134 = vector.broadcast %133 : vector<64x1xf32> to vector<64x32xf32>
    %135 = arith.mulf %130, %134 : vector<64x32xf32>
    %136 = vector.broadcast %116 : vector<1x32xf32> to vector<64x32xf32>
    %137 = arith.mulf %135, %136 : vector<64x32xf32>
    %138 = vector.broadcast %117 : vector<1x32xf32> to vector<64x32xf32>
    %139 = arith.addf %137, %138 : vector<64x32xf32>
    %c0_56 = arith.constant 0 : index
    %c0_57 = arith.constant 0 : index
    %140 = vector.load %arg10[%c0_56, %c0_57] : memref<32x128xf32, #tpu.memory_space<vmem>>, vector<32x128xf32>
    %cst_58 = arith.constant dense<0.000000e+00> : vector<64x128xf32>
    %141 = tpu.matmul %139, %140, %cst_58 {dimension_numbers = #tpu.dot_dimension_numbers<[1], [0], [0], [1], [0, 0, 1, 1], [], []>} : vector<64x32xf32>, vector<32x128xf32>, vector<64x128xf32> -> vector<64x128xf32>
    %c0_59 = arith.constant 0 : index
    %c0_60 = arith.constant 0 : index
    %142 = vector.load %arg11[%c0_59, %c0_60] : memref<1x128xf32, #tpu.memory_space<vmem>>, vector<1x128xf32>
    %143 = vector.broadcast %142 : vector<1x128xf32> to vector<64x128xf32>
    %144 = arith.addf %141, %143 : vector<64x128xf32>
    %cst_61 = arith.constant 5.000000e-01 : f32
    %145 = vector.broadcast %cst_61 : f32 to vector<64x128xf32>
    %146 = arith.mulf %145, %144 : vector<64x128xf32>
    %cst_62 = arith.constant 0.707106769 : f32
    %147 = vector.broadcast %cst_62 : f32 to vector<64x128xf32>
    %148 = arith.mulf %144, %147 : vector<64x128xf32>
    %149 = math.erf %148 : vector<64x128xf32>
    %cst_63 = arith.constant 1.000000e+00 : f32
    %150 = vector.broadcast %cst_63 : f32 to vector<64x128xf32>
    %151 = arith.addf %150, %149 : vector<64x128xf32>
    %152 = arith.mulf %146, %151 : vector<64x128xf32>
    %c0_64 = arith.constant 0 : index
    %c0_65 = arith.constant 0 : index
    %153 = vector.load %arg12[%c0_64, %c0_65] : memref<128x32xf32, #tpu.memory_space<vmem>>, vector<128x32xf32>
    %cst_66 = arith.constant dense<0.000000e+00> : vector<64x32xf32>
    %154 = tpu.matmul %152, %153, %cst_66 {dimension_numbers = #tpu.dot_dimension_numbers<[1], [0], [0], [1], [0, 0, 1, 1], [], []>} : vector<64x128xf32>, vector<128x32xf32>, vector<64x32xf32> -> vector<64x32xf32>
    %c0_67 = arith.constant 0 : index
    %c0_68 = arith.constant 0 : index
    %155 = vector.load %arg13[%c0_67, %c0_68] : memref<1x32xf32, #tpu.memory_space<vmem>>, vector<1x32xf32>
    %156 = vector.broadcast %155 : vector<1x32xf32> to vector<64x32xf32>
    %157 = arith.addf %154, %156 : vector<64x32xf32>
    %158 = arith.addf %115, %157 : vector<64x32xf32>
    %159 = vector.shape_cast %158 : vector<64x32xf32> to vector<1x64x32xf32>
    %c0_69 = arith.constant 0 : index
    %c0_70 = arith.constant 0 : index
    %c0_71 = arith.constant 0 : index
    %160 = vector.load %arg14[%c0_69, %c0_70, %c0_71] : memref<1x64x32xf32, #tpu.memory_space<vmem>>, vector<1x64x32xf32>
    tpu.vector_store %arg14[%c0_69, %c0_70, %c0_71], %159 {strides = array<i32>} : memref<1x64x32xf32, #tpu.memory_space<vmem>>, vector<1x64x32xf32>,
    return
  }
  func.func @transform_0(%arg0: i32) -> (i32, i32, i32) {
    %c0_i32 = arith.constant 0 : i32
    %c0_i32_0 = arith.constant 0 : i32
    %c0_i32_1 = arith.constant 0 : i32
    return %arg0, %c0_i32, %c0_i32_0 : i32, i32, i32
  }
  func.func @transform_1(%arg0: i32) -> (i32, i32) {
    %c0_i32 = arith.constant 0 : i32
    %c0_i32_0 = arith.constant 0 : i32
    %c0_i32_1 = arith.constant 0 : i32
    return %c0_i32, %c0_i32_0 : i32, i32
  }
  func.func @transform_2(%arg0: i32) -> (i32, i32) {
    %c0_i32 = arith.constant 0 : i32
    %c0_i32_0 = arith.constant 0 : i32
    %c0_i32_1 = arith.constant 0 : i32
    return %c0_i32, %c0_i32_0 : i32, i32
  }
  func.func @transform_3(%arg0: i32) -> (i32, i32) {
    %c0_i32 = arith.constant 0 : i32
    %c0_i32_0 = arith.constant 0 : i32
    %c0_i32_1 = arith.constant 0 : i32
    return %c0_i32, %c0_i32_0 : i32, i32
  }
  func.func @transform_4(%arg0: i32) -> (i32, i32) {
    %c0_i32 = arith.constant 0 : i32
    %c0_i32_0 = arith.constant 0 : i32
    %c0_i32_1 = arith.constant 0 : i32
    return %c0_i32, %c0_i32_0 : i32, i32
  }
  func.func @transform_5(%arg0: i32) -> (i32, i32) {
    %c0_i32 = arith.constant 0 : i32
    %c0_i32_0 = arith.constant 0 : i32
    %c0_i32_1 = arith.constant 0 : i32
    return %c0_i32, %c0_i32_0 : i32, i32
  }
  func.func @transform_6(%arg0: i32) -> (i32, i32) {
    %c0_i32 = arith.constant 0 : i32
    %c0_i32_0 = arith.constant 0 : i32
    %c0_i32_1 = arith.constant 0 : i32
    return %c0_i32, %c0_i32_0 : i32, i32
  }
  func.func @transform_7(%arg0: i32) -> (i32, i32) {
    %c0_i32 = arith.constant 0 : i32
    %c0_i32_0 = arith.constant 0 : i32
    %c0_i32_1 = arith.constant 0 : i32
    return %c0_i32, %c0_i32_0 : i32, i32
  }
  func.func @transform_8(%arg0: i32) -> (i32, i32) {
    %c0_i32 = arith.constant 0 : i32
    %c0_i32_0 = arith.constant 0 : i32
    %c0_i32_1 = arith.constant 0 : i32
    return %c0_i32, %c0_i32_0 : i32, i32
  }
  func.func @transform_9(%arg0: i32) -> (i32, i32) {
    %c0_i32 = arith.constant 0 : i32
    %c0_i32_0 = arith.constant 0 : i32
    %c0_i32_1 = arith.constant 0 : i32
    return %c0_i32, %c0_i32_0 : i32, i32
  }
  func.func @transform_10(%arg0: i32) -> (i32, i32) {
    %c0_i32 = arith.constant 0 : i32
    %c0_i32_0 = arith.constant 0 : i32
    %c0_i32_1 = arith.constant 0 : i32
    return %c0_i32, %c0_i32_0 : i32, i32
  }
  func.func @transform_11(%arg0: i32) -> (i32, i32) {
    %c0_i32 = arith.constant 0 : i32
    %c0_i32_0 = arith.constant 0 : i32
    %c0_i32_1 = arith.constant 0 : i32
    return %c0_i32, %c0_i32_0 : i32, i32
  }
  func.func @transform_12(%arg0: i32) -> (i32, i32) {
    %c0_i32 = arith.constant 0 : i32
    %c0_i32_0 = arith.constant 0 : i32
    %c0_i32_1 = arith.constant 0 : i32
    return %c0_i32, %c0_i32_0 : i32, i32
  }
  func.func @transform_13(%arg0: i32) -> (i32, i32, i32) {
    %c0_i32 = arith.constant 0 : i32
    %c0_i32_0 = arith.constant 0 : i32
    %c0_i32_1 = arith.constant 0 : i32
    return %arg0, %c0_i32, %c0_i32_0 : i32, i32, i32
  }
}

</mosaic_0001>

<bundles_post_ra>
// kernel: tpu_custom_call.1
= control target key start
LH: loop header
LB: loop body
LE: loop exit
PB: predicated region body
PF: predicated region fallthrough
CT: control target
= control target key end

     0   :  { %s4146_s25 = smov 0   ;;  %s5245_s0 = inlined_call_operand.vmem [shape: f32[2,64,32], index: 0, kind: input, shape index: {}]   ;;  %s5246_s1 = inlined_call_operand.vmem [shape: f32[1,32], index: 1, kind: input, shape index: {}]   ;;  %s5247_s2 = inlined_call_operand.vmem [shape: f32[1,32], index: 2, kind: input, shape index: {}]   ;;  %s5248_s3 = inlined_call_operand.vmem [shape: f32[32,96], index: 3, kind: input, shape index: {}]   ;;  %s5249_s4 = inlined_call_operand.vmem [shape: f32[1,96], index: 4, kind: input, shape index: {}]   ;;  %s5250_s5 = inlined_call_operand.vmem [shape: f32[32,32], index: 5, kind: input, shape index: {}]   ;;  %s5251_s6 = inlined_call_operand.vmem [shape: f32[1,32], index: 6, kind: input, shape index: {}]   ;;  %s5252_s7 = inlined_call_operand.vmem [shape: f32[1,32], index: 7, kind: input, shape index: {}]   ;;  %s5253_s8 = inlined_call_operand.vmem [shape: f32[1,32], index: 8, kind: input, shape index: {}]   ;;  %s5254_s9 = inlined_call_operand.vmem [shape: f32[32,128], index: 9, kind: input, shape index: {}]   ;;  %s5255_s10 = inlined_call_operand.vmem [shape: f32[1,128], index: 10, kind: input, shape index: {}]   ;;  %s5256_s11 = inlined_call_operand.vmem [shape: f32[128,32], index: 11, kind: input, shape index: {}]   ;;  %s5257_s12 = inlined_call_operand.vmem [shape: f32[1,32], index: 12, kind: input, shape index: {}]   ;;  %s5258_s13 = inlined_call_operand.vmem [shape: f32[2,64,32], index: 13, kind: output, shape index: {}]  }
   0x1 LB: > { %s3195_s26 = sadd.s32 4294967295, %s4059_s25   ;;  %p3199_p0 = scmp.ge.s32.totalorder %s4059_s25, 1  ;;  %s4059_s25 = sphi %s4146_s25, %s23_s25  }
   0x2   : > { %p387_p1 = scmp.lt.s32.totalorder %s4059_s25, 3 }
   0x4   : > { %p388_p2 = pnand %p3199_p0, %p387_p1 }
   0x5   : > { %p431_p3 = scmp.lt.s32.totalorder (!%p388_p2), %s3195_s26, 1  ;;  %s4062_s15 = smov (!%p388_p2), 96  }
   0x6   : > { %391 = sbr.rel (%p388_p2) target bundleno = 3192 (0xc78), region = 72  ;;  %s4063_s16 = smov (!%p388_p2), 64  }
   0x7   : > { %s4064_s17 = smov (!%p388_p2), 88   ;;  %s4065_s18 = smov (!%p388_p2), 80  }
   0x8   : > { %s4066_s19 = smov (!%p388_p2), 120   ;;  %s4067_s20 = smov (!%p388_p2), 112  }
   0x9   : > { %s4068_s21 = smov (!%p388_p2), 56   ;;  %s4069_s22 = smov (!%p388_p2), 48  }
   0xa   : > { %s4070_s23 = smov (!%p388_p2), 72   ;;  %s4071_s24 = smov (!%p388_p2), 104  }
   0xb   : > { %s5260_s26 = smov (!%p431_p3, %s3195_s26), 1  ;;  %vm451_vm0 = vcmask 261120   ;;  %v588_v56 = vld [vmem:[%s5248_s3 + $0x18] sm:$0xff]  ;;  %v587_v57 = vld [vmem:[%s5248_s3 + $0x10] sm:$0xff]  ;;  %v586_v58 = vld [vmem:[%s5248_s3 + $0x8] sm:$0xff]  ;;  %vm737_vm2 = vcmask 785408  }
   0xc   : > { %s3334_s27 = sshll.u32 %s5260_s26, 6  ;;  %3524 = vmatprep.subr.mxu0 %v588_v56  ;;  %v585_v59 = vld [vmem:[%s5248_s3] sm:$0xff]  ;;  %vm778_vm3 = vcmask 64512   ;;  %vm916_vm4 = vcmask 523264   ;;  %s4072_s28 = smov 40   ;;  %vm2501_vm5 = vcmask 195584  }
   0xd   : > { %s4162_s30 = scalar_lea.vmem %s5245_s0, %s3334_s27  ;;  %3525 = vmatpush3.msra.mxu0 %v588_v56  ;;  %s4073_s29 = smov 8   ;;  %vm2492_vm6 = vcmask 130048  }
   0xe   : > { %v441_v0 = vld [vmem:[%s4162_s30] sm:$0xff]  ;;  %v443_v1 = vld [vmem:[%s4162_s30 + $0x10] sm:$0xff]  ;;  %v442_v2 = vld [vmem:[%s4162_s30 + $0x8] sm:$0xff]  ;;  %3526 = vmatprep.subr.mxu0 %v587_v57  ;;  %s4074_s14 = smov 16  }
   0xf   : > { %v452_v3 = vsel %vm451_vm0, %v441_v0, 0.0  ;;  %v458_v4 = vsel %vm451_vm0, %v443_v1, 0.0  ;;  %v444_v5 = vld [vmem:[%s4162_s30 + $0x18] sm:$0xff]  ;;  %v455_v6 = vsel %vm451_vm0, %v442_v2, 0.0  ;;  %v445_v8 = vld [vmem:[%s4162_s30 + $0x20] sm:$0xff]  ;;  %v446_v9 = vld [vmem:[%s4162_s30 + $0x28] sm:$0xff]  ;;  %3527 = vmatpush3.msra.mxu0 %v587_v57 }
  0x10   : > { %453 = vadd.xlane.f32.xlu0 %v452_v3  ;;  %459 = vadd.xlane.f32.xlu1 %v458_v4  ;;  %v461_v7 = vsel %vm451_vm0, %v444_v5, 0.0  ;;  %v464_v10 = vsel %vm451_vm0, %v445_v8, 0.0  ;;  %v467_v11 = vsel %vm451_vm0, %v446_v9, 0.0  ;;  %v447_v12 = vld [vmem:[%s4162_s30 + $0x30] sm:$0xff]  ;;  %v448_v13 = vld [vmem:[%s4162_s30 + $0x38] sm:$0xff] }
  0x11   : > { %v470_v14 = vsel %vm451_vm0, %v447_v12, 0.0  ;;  %v473_v15 = vsel %vm451_vm0, %v448_v13, 0.0  ;;  %3528 = vmatprep.subr.mxu0 %v586_v58  ;;  %v3206_v57 = vld [vmem:[%s5249_s4] ss:$0 sm:$0xff] }
  0x12   : > { %3529 = vmatpush3.msra.mxu0 %v586_v58 }
  0x13   : > { %3530 = vmatprep.subr.mxu0 %v585_v59 }
  0x14   : > { %456 = vadd.xlane.f32.xlu0 %v455_v6  ;;  %462 = vadd.xlane.f32.xlu1 %v461_v7 }
  0x15   : > { %3531 = vmatpush3.msra.mxu0 %v585_v59  ;;  %v4061_v59 = vmov 1.0  }
  0x18   : > { %465 = vadd.xlane.f32.xlu0 %v464_v10  ;;  %468 = vadd.xlane.f32.xlu1 %v467_v11 }
  0x1c   : > { %471 = vadd.xlane.f32.xlu0 %v470_v14  ;;  %474 = vadd.xlane.f32.xlu1 %v473_v15 }
  0x99   : > { %v454_v16 = vpop.xlane.xlu0 %453  ;;  %v460_v17 = vpop.xlane.xlu1 %459 }
  0x9a   : > { %v477_v18 = vmul.f32 0.03125, %v454_v16  ;;  %v479_v19 = vmul.f32 0.03125, %v460_v17 }
  0x9c   : > { %v4180_v20 = vsub.f32 %v441_v0, %v477_v18  ;;  %v4182_v21 = vsub.f32 %v443_v1, %v479_v19 }
  0x9d   : > { %v457_v22 = vpop.xlane.xlu0 %456  ;;  %v463_v23 = vpop.xlane.xlu1 %462 }
  0x9e   : > { %v478_v24 = vmul.f32 0.03125, %v457_v22  ;;  %v480_v25 = vmul.f32 0.03125, %v463_v23  ;;  %v493_v26 = vmul.f32 %v4180_v20, %v4180_v20  ;;  %v495_v27 = vmul.f32 %v4182_v21, %v4182_v21  ;;  %v3204_v22 = vld [vmem:[%s5246_s1] ss:$0 sm:$0xff] }
  0xa0   : > { %v4188_v28 = vsub.f32 %v442_v2, %v478_v24  ;;  %v4190_v29 = vsub.f32 %v444_v5, %v480_v25  ;;  %v501_v30 = vsel %vm451_vm0, %v493_v26, 0.0  ;;  %v507_v33 = vsel %vm451_vm0, %v495_v27, 0.0  ;;  %v3205_v25 = vld [vmem:[%s5247_s2] ss:$0 sm:$0xff] }
  0xa1   : > { %502 = vadd.xlane.f32.xlu0 %v501_v30  ;;  %v466_v31 = vpop.xlane.xlu0 %465  ;;  %v469_v32 = vpop.xlane.xlu1 %468 }
  0xa2   : > { %v481_v34 = vmul.f32 0.03125, %v466_v31  ;;  %v482_v35 = vmul.f32 0.03125, %v469_v32  ;;  %v494_v36 = vmul.f32 %v4188_v28, %v4188_v28  ;;  %v496_v37 = vmul.f32 %v4190_v29, %v4190_v29 }
  0xa4   : > { %v4198_v38 = vsub.f32 %v445_v8, %v481_v34  ;;  %v4200_v39 = vsub.f32 %v446_v9, %v482_v35  ;;  %v504_v40 = vsel %vm451_vm0, %v494_v36, 0.0  ;;  %v510_v43 = vsel %vm451_vm0, %v496_v37, 0.0 }
  0xa5   : > { %508 = vadd.xlane.f32.xlu0 %v507_v33  ;;  %505 = vadd.xlane.f32.xlu1 %v504_v40  ;;  %v472_v41 = vpop.xlane.xlu0 %471  ;;  %v475_v42 = vpop.xlane.xlu1 %474 }
  0xa6   : > { %v483_v44 = vmul.f32 0.03125, %v472_v41  ;;  %v484_v45 = vmul.f32 0.03125, %v475_v42  ;;  %v497_v46 = vmul.f32 %v4198_v38, %v4198_v38  ;;  %v498_v47 = vmul.f32 %v4200_v39, %v4200_v39 }
  0xa8   : > { %v4208_v48 = vsub.f32 %v447_v12, %v483_v44  ;;  %v4210_v49 = vsub.f32 %v448_v13, %v484_v45  ;;  %v513_v50 = vsel %vm451_vm0, %v497_v46, 0.0  ;;  %v516_v51 = vsel %vm451_vm0, %v498_v47, 0.0 }
  0xa9   : > { %511 = vadd.xlane.f32.xlu1 %v510_v43  ;;  %514 = vadd.xlane.f32.xlu0 %v513_v50 }
  0xaa   : > { %v499_v52 = vmul.f32 %v4208_v48, %v4208_v48  ;;  %v500_v53 = vmul.f32 %v4210_v49, %v4210_v49 }
  0xac   : > { %v519_v54 = vsel %vm451_vm0, %v499_v52, 0.0  ;;  %v522_v55 = vsel %vm451_vm0, %v500_v53, 0.0 }
  0xad   : > { %517 = vadd.xlane.f32.xlu1 %v516_v51  ;;  %520 = vadd.xlane.f32.xlu0 %v519_v54 }
  0xb1   : > { %523 = vadd.xlane.f32.xlu1 %v522_v55 }
 0x12a   : > { %v503_v60 = vpop.xlane.xlu0 %502 }
 0x12b   : > { %v525_v61 = vmul.f32 0.03125, %v503_v60 }
 0x12d   : > { %v533_v62 = vadd.f32 1e-06, %v525_v61 }
 0x12e   : > { %v506_v63 = vpop.xlane.xlu1 %505  ;;  %v509_v0 = vpop.xlane.xlu0 %508 }
 0x12f   : > { %3875 = vrsqrt.f32 %v533_v62  ;;  %v526_v1 = vmul.f32 0.03125, %v506_v63  ;;  %v527_v2 = vmul.f32 0.03125, %v509_v0 }
 0x131   : > { %v534_v3 = vadd.f32 1e-06, %v526_v1  ;;  %v535_v4 = vadd.f32 1e-06, %v527_v2 }
 0x132   : > { %v512_v5 = vpop.xlane.xlu1 %511  ;;  %v515_v6 = vpop.xlane.xlu0 %514 }
 0x133   : > { %3877 = vrsqrt.f32 %v534_v3  ;;  %v528_v7 = vmul.f32 0.03125, %v512_v5  ;;  %v529_v8 = vmul.f32 0.03125, %v515_v6 }
 0x134   : > { %3879 = vrsqrt.f32 %v535_v4 }
 0x135   : > { %v536_v9 = vadd.f32 1e-06, %v528_v7  ;;  %v537_v10 = vadd.f32 1e-06, %v529_v8 }
 0x136   : > { %v518_v11 = vpop.xlane.xlu1 %517  ;;  %v521_v12 = vpop.xlane.xlu0 %520 }
 0x137   : > { %3881 = vrsqrt.f32 %v536_v9  ;;  %v530_v13 = vmul.f32 0.03125, %v518_v11  ;;  %v531_v14 = vmul.f32 0.03125, %v521_v12 }
 0x138   : > { %3883 = vrsqrt.f32 %v537_v10 }
 0x139   : > { %v538_v15 = vadd.f32 1e-06, %v530_v13  ;;  %v539_v16 = vadd.f32 1e-06, %v531_v14 }
 0x13a   : > { %v524_v17 = vpop.xlane.xlu1 %523 }
 0x13b   : > { %3885 = vrsqrt.f32 %v538_v15  ;;  %v532_v18 = vmul.f32 0.03125, %v524_v17 }
 0x13c   : > { %v3876_v19 = vpop.eup %3875  ;;  %3887 = vrsqrt.f32 %v539_v16 }
 0x13d   : > { %v540_v23 = vadd.f32 1e-06, %v532_v18  ;;  %v549_v24 = vmul.f32 %v3876_v19, %v4180_v20 }
 0x13f   : > { %3889 = vrsqrt.f32 %v540_v23  ;;  %v563_v26 = vmul.f32 %v3204_v22, %v549_v24 }
 0x140   : > { %v3878_v27 = vpop.eup %3877 }
 0x141   : > { %v3880_v30 = vpop.eup %3879  ;;  %v577_v31 = vadd.f32 %v3205_v25, %v563_v26  ;;  %v550_v32 = vmul.f32 %v3878_v27, %v4188_v28 }
 0x142   : > { %v551_v33 = vmul.f32 %v3880_v30, %v4182_v21 }
 0x143   : > { %3532 = vmatprep.mubr.msk.f32.mxu0 %vm451_vm0, %v577_v31  ;;  %v564_v34 = vmul.f32 %v3204_v22, %v550_v32 }
 0x144   : > { %v3882_v35 = vpop.eup %3881  ;;  %v565_v36 = vmul.f32 %v3204_v22, %v551_v33 }
 0x145   : > { %v3884_v37 = vpop.eup %3883  ;;  %v578_v20 = vadd.f32 %v3205_v25, %v564_v34  ;;  %v552_v40 = vmul.f32 %v3882_v35, %v4190_v29 }
 0x146   : > { %v579_v41 = vadd.f32 %v3205_v25, %v565_v36  ;;  %v553_v42 = vmul.f32 %v3884_v37, %v4198_v38 }
 0x147   : > { %3533 = vmatmul.mubr.msk.f32.vlgmr.msra.gmra.mxu0 %vm451_vm0, %v578_v20  ;;  %v566_v43 = vmul.f32 %v3204_v22, %v552_v40 }
 0x148   : > { %v3886_v44 = vpop.eup %3885  ;;  %3535 = vmatprep.mubr.msk.f32.mxu0 %vm451_vm0, %v579_v41  ;;  %v567_v28 = vmul.f32 %v3204_v22, %v553_v42 }
 0x149   : > { %v3888_v21 = vpop.eup %3887  ;;  %v580_v45 = vadd.f32 %v3205_v25, %v566_v43  ;;  %v554_v46 = vmul.f32 %v3886_v44, %v4200_v39 }
 0x14a   : > { %v581_v47 = vadd.f32 %v3205_v25, %v567_v28  ;;  %v555_v50 = vmul.f32 %v3888_v21, %v4208_v48  ;;  %v725_v48 = vlaneseq }
 0x14b   : > { %3536 = vmatmul.mubr.msk.f32.gmra.mxu0 %vm451_vm0, %v580_v45  ;;  %v568_v29 = vmul.f32 %v3204_v22, %v554_v46 }
 0x14c   : > { %v3890_v51 = vpop.eup %3889  ;;  %3538 = vmatprep.mubr.msk.f32.mxu0 %vm451_vm0, %v581_v47  ;;  %v569_v38 = vmul.f32 %v3204_v22, %v555_v50  ;;  %v726_v56 = vand.u32 127, %v725_v48 }
 0x14d   : > { %v582_v52 = vadd.f32 %v3205_v25, %v568_v29  ;;  %v556_v53 = vmul.f32 %v3890_v51, %v4210_v49 }
 0x14e   : > { %v583_v54 = vadd.f32 %v3205_v25, %v569_v38  ;;  %vm727_vm1 = vcmp.lt.s32.totalorder %v726_v56, 32 }
 0x14f   : > { %3539 = vmatmul.mubr.msk.f32.gmra.mxu0 %vm451_vm0, %v582_v52  ;;  %v570_v55 = vmul.f32 %v3204_v22, %v556_v53  ;;  %v728_v60 = vsel %vm727_vm1, 0.35355338, %v4061_v59 }
 0x150   : > { %3541 = vmatprep.mubr.msk.f32.mxu0 %vm451_vm0, %v583_v54 }
 0x151   : > { %v584_v39 = vadd.f32 %v3205_v25, %v570_v55 }
 0x153   : > { %3542 = vmatmul.mubr.msk.f32.gmra.mxu0 %vm451_vm0, %v584_v39 }
 0x207   : > { %v3534_v58 = vpop.f32.mrf.mxu0 }
 0x208   : > { %v692_v49 = vadd.f32 %v3534_v58, %v3206_v57 }
 0x209   : > { %v686_v61 = vpop.f32.mrf.mxu0 }
 0x20a   : > { %v730_v62 = vmul.f32 %v728_v60, %v692_v49  ;;  %v687_v63 = vadd.f32 %v3206_v57, %v686_v61 }
 0x20b   : > { %v3537_v0 = vpop.f32.mrf.mxu0 }
 0x20c   : > { %739 = vst.msk [vmem:[#allocation2 + $0x8] sm:$0xff] %vm737_vm2, %v730_v62  ;;  %v729_v1 = vmul.f32 %v728_v60, %v687_v63  ;;  %v702_v2 = vadd.f32 %v3537_v0, %v3206_v57 }
 0x20d   : > { %v696_v3 = vpop.f32.mrf.mxu0 }
 0x20e   : > { %738 = vst.msk [vmem:[#allocation2] sm:$0xff] %vm737_vm2, %v729_v1  ;;  %v732_v4 = vmul.f32 %v728_v60, %v702_v2  ;;  %v697_v5 = vadd.f32 %v3206_v57, %v696_v3 }
 0x20f   : > { %v3540_v6 = vpop.f32.mrf.mxu0 }
 0x210   : > { %741 = vst.msk [vmem:[#allocation2 + $0x18] sm:$0xff] %vm737_vm2, %v732_v4  ;;  %v731_v7 = vmul.f32 %v728_v60, %v697_v5  ;;  %v712_v8 = vadd.f32 %v3540_v6, %v3206_v57 }
 0x211   : > { %v706_v9 = vpop.f32.mrf.mxu0 }
 0x212   : > { %740 = vst.msk [vmem:[#allocation2 + $0x10] sm:$0xff] %vm737_vm2, %v731_v7  ;;  %v734_v10 = vmul.f32 %v728_v60, %v712_v8  ;;  %v707_v11 = vadd.f32 %v3206_v57, %v706_v9 }
 0x213   : > { %v3543_v12 = vpop.f32.mrf.mxu0  ;;  %v4281_v26 = vld [vmem:[#allocation2 + $0x8] sm:$0xff] }
 0x214   : > { %743 = vst.msk [vmem:[#allocation2 + $0x28] sm:$0xff] %vm737_vm2, %v734_v10  ;;  %v733_v13 = vmul.f32 %v728_v60, %v707_v11  ;;  %v722_v14 = vadd.f32 %v3543_v12, %v3206_v57 }
 0x215   : > { %v716_v15 = vpop.f32.mrf.mxu0  ;;  %v4262_v16 = vld [vmem:[#allocation2] sm:$0xff] }
 0x216   : > { %742 = vst.msk [vmem:[#allocation2 + $0x20] sm:$0xff] %vm737_vm2, %v733_v13  ;;  %v736_v17 = vmul.f32 %v728_v60, %v722_v14  ;;  %v717_v18 = vadd.f32 %v3206_v57, %v716_v15  ;;  %3560 = vmatprep.mubr.msk.f32.mxu1 %vm778_vm3, %v4262_v16 }
 0x217   : > { %v4275_v24 = vld [vmem:[#allocation2 + $0x18] sm:$0xff] }
 0x218   : > { %745 = vst.msk [vmem:[#allocation2 + $0x38] sm:$0xff] %vm737_vm2, %v736_v17  ;;  %v735_v19 = vmul.f32 %v728_v60, %v717_v18 }
 0x219   : > { %v4288_v30 = vld [vmem:[#allocation2 + $0x10] sm:$0xff] }
 0x21a   : > { %744 = vst.msk [vmem:[#allocation2 + $0x30] sm:$0xff] %vm737_vm2, %v735_v19 }
 0x21b   : > { %v4278_v25 = vld [vmem:[#allocation2 + $0x28] sm:$0xff] }
 0x21d   : > { %v4284_v27 = vld [vmem:[#allocation2 + $0x20] sm:$0xff] }
 0x21f   : > { %v4269_v22 = vld [vmem:[#allocation2 + $0x38] sm:$0xff] }
 0x220   : > { %776 = vrot.lane.b32.xlu0 %v4269_v22, %s4062_s15 }
 0x221   : > { %v4272_v23 = vld [vmem:[#allocation2 + $0x30] sm:$0xff] }
 0x222   : > { %774 = vrot.lane.b32.xlu1 %v4272_v23, %s4062_s15 }
 0x224   : > { %768 = vrot.lane.b32.xlu0 %v4275_v24, %s4062_s15 }
 0x226   : > { %772 = vrot.lane.b32.xlu1 %v4278_v25, %s4062_s15 }
 0x228   : > { %764 = vrot.lane.b32.xlu0 %v4281_v26, %s4062_s15 }
 0x22a   : > { %770 = vrot.lane.b32.xlu1 %v4284_v27, %s4062_s15 }
 0x22c   : > { %1011 = vrot.lane.b32.xlu0 %v4269_v22, %s4063_s16 }
 0x22e   : > { %766 = vrot.lane.b32.xlu1 %v4288_v30, %s4062_s15 }
 0x230   : > { %1007 = vrot.lane.b32.xlu0 %v4278_v25, %s4063_s16 }
 0x232   : > { %762 = vrot.lane.b32.xlu1 %v4262_v16, %s4062_s15 }
 0x234   : > { %1005 = vrot.lane.b32.xlu0 %v4284_v27, %s4063_s16 }
 0x236   : > { %1003 = vrot.lane.b32.xlu1 %v4275_v24, %s4063_s16 }
 0x238   : > { %1001 = vrot.lane.b32.xlu0 %v4288_v30, %s4063_s16 }
 0x23a   : > { %999 = vrot.lane.b32.xlu1 %v4281_v26, %s4063_s16 }
 0x23c   : > { %997 = vrot.lane.b32.xlu0 %v4262_v16, %s4063_s16 }
 0x23e   : > { %1188 = vrot.lane.b32.xlu1 %v4269_v22, %s4064_s17 }
 0x240   : > { %1184 = vrot.lane.b32.xlu0 %v4278_v25, %s4064_s17 }
 0x242   : > { %1182 = vrot.lane.b32.xlu1 %v4284_v27, %s4064_s17 }
 0x244   : > { %1180 = vrot.lane.b32.xlu0 %v4275_v24, %s4064_s17 }
 0x246   : > { %1598 = vrot.lane.b32.xlu1 %v4269_v22, %s4065_s18 }
 0x248   : > { %1178 = vrot.lane.b32.xlu0 %v4288_v30, %s4064_s17 }
 0x24a   : > { %1594 = vrot.lane.b32.xlu1 %v4278_v25, %s4065_s18 }
 0x24c   : > { %1176 = vrot.lane.b32.xlu0 %v4281_v26, %s4064_s17 }
 0x24e   : > { %1592 = vrot.lane.b32.xlu1 %v4284_v27, %s4065_s18 }
 0x250   : > { %1174 = vrot.lane.b32.xlu0 %v4262_v16, %s4064_s17 }
 0x252   : > { %1009 = vrot.lane.b32.xlu1 %v4272_v23, %s4063_s16 }
 0x256   : > { %1186 = vrot.lane.b32.xlu1 %v4272_v23, %s4064_s17 }
 0x25a   : > { %1596 = vrot.lane.b32.xlu1 %v4272_v23, %s4065_s18 }
 0x292   : > { %v777_v31 = vpop.permute.xlu0 %776 }
 0x293   : > { %3544 = vmatprep.subr.msk.mxu1 %vm778_vm3, %v777_v31 }
 0x294   : > { %3545 = vmatpush3.xpose.msk.msra.mxu1 %vm778_vm3, %v777_v31  ;;  %v775_v32 = vpop.permute.xlu1 %774 }
 0x295   : > { %3546 = vmatprep.subr.msk.mxu1 %vm778_vm3, %v775_v32 }
 0x296   : > { %v769_v33 = vpop.permute.xlu0 %768 }
 0x298   : > { %3547 = vmatpush3.xpose.msk.msra.mxu1 %vm778_vm3, %v775_v32  ;;  %v773_v34 = vpop.permute.xlu1 %772 }
 0x299   : > { %3548 = vmatprep.subr.msk.mxu1 %vm778_vm3, %v773_v34 }
 0x29a   : > { %v765_v35 = vpop.permute.xlu0 %764 }
 0x29c   : > { %3549 = vmatpush3.xpose.msk.msra.mxu1 %vm778_vm3, %v773_v34  ;;  %v771_v36 = vpop.permute.xlu1 %770 }
 0x29d   : > { %3550 = vmatprep.subr.msk.mxu1 %vm778_vm3, %v771_v36 }
 0x29e   : > { %v1012_v37 = vpop.permute.xlu0 %1011 }
 0x29f   : > { %3572 = vmatprep.subr.mxu0 %v1012_v37 }
 0x2a0   : > { %3551 = vmatpush3.xpose.msk.msra.mxu1 %vm778_vm3, %v771_v36  ;;  %3573 = vmatpush3.msra.mxu0 %v1012_v37  ;;  %v767_v20 = vpop.permute.xlu1 %766 }
 0x2a1   : > { %3552 = vmatprep.subr.msk.mxu1 %vm778_vm3, %v769_v33 }
 0x2a2   : > { %v1008_v45 = vpop.permute.xlu0 %1007 }
 0x2a4   : > { %3553 = vmatpush3.xpose.msk.msra.mxu1 %vm778_vm3, %v769_v33  ;;  %v763_v40 = vpop.permute.xlu1 %762 }
 0x2a5   : > { %3554 = vmatprep.subr.msk.mxu1 %vm778_vm3, %v767_v20 }
 0x2a6   : > { %v1006_v47 = vpop.permute.xlu0 %1005 }
 0x2a8   : > { %3555 = vmatpush3.xpose.msk.msra.mxu1 %vm778_vm3, %v767_v20  ;;  %v1004_v41 = vpop.permute.xlu1 %1003 }
 0x2a9   : > { %3556 = vmatprep.subr.msk.mxu1 %vm778_vm3, %v765_v35 }
 0x2aa   : > { %v1002_v51 = vpop.permute.xlu0 %1001 }
 0x2ac   : > { %3557 = vmatpush3.xpose.msk.msra.mxu1 %vm778_vm3, %v765_v35  ;;  %v1000_v42 = vpop.permute.xlu1 %999 }
 0x2ad   : > { %3558 = vmatprep.subr.msk.mxu1 %vm778_vm3, %v763_v40 }
 0x2ae   : > { %v998_v52 = vpop.permute.xlu0 %997 }
 0x2b0   : > { %3559 = vmatpush3.xpose.msk.msra.mxu1 %vm778_vm3, %v763_v40  ;;  %v4331_v43 = vpop.permute.xlu1 %1188 }
 0x2b2   : > { %v1185_v2 = vpop.permute.xlu0 %1184 }
 0x2b3   : > { %3561 = vmatmul.mubr.msk.f32.vlgmr.msra.gmra.mxu1 %vm778_vm3, %v4281_v26 }
 0x2b4   : > { %3563 = vmatprep.mubr.msk.f32.mxu1 %vm778_vm3, %v4288_v30  ;;  %v4337_v44 = vpop.permute.xlu1 %1182 }
 0x2b6   : > { %v1181_v3 = vpop.permute.xlu0 %1180 }
 0x2b7   : > { %3564 = vmatmul.mubr.msk.f32.gmra.mxu1 %vm778_vm3, %v4275_v24 }
 0x2b8   : > { %3566 = vmatprep.mubr.msk.f32.mxu1 %vm778_vm3, %v4284_v27  ;;  %v1599_v28 = vpop.permute.xlu1 %1598 }
 0x2b9   : > { %3656 = vmatprep.subr.msk.mxu1 %vm778_vm3, %v1599_v28 }
 0x2ba   : > { %3657 = vmatpush3.xpose.msk.msra.mxu1 %vm778_vm3, %v1599_v28  ;;  %v1179_v4 = vpop.permute.xlu0 %1178 }
 0x2bb   : > { %3567 = vmatmul.mubr.msk.f32.gmra.mxu1 %vm778_vm3, %v4278_v25 }
 0x2bc   : > { %3569 = vmatprep.mubr.msk.f32.mxu1 %vm778_vm3, %v4272_v23  ;;  %v1595_v21 = vpop.permute.xlu1 %1594 }
 0x2be   : > { %v1177_v5 = vpop.permute.xlu0 %1176 }
 0x2bf   : > { %3570 = vmatmul.mubr.msk.f32.gmra.mxu1 %vm778_vm3, %v4269_v22 }
 0x2c0   : > { %v1593_v46 = vpop.permute.xlu1 %1592 }
 0x2c2   : > { %v1175_v6 = vpop.permute.xlu0 %1174 }
 0x2c4   : > { %v1010_v50 = vpop.permute.xlu1 %1009 }
 0x2c5   : > { %3574 = vmatprep.subr.mxu0 %v1010_v50 }
 0x2c6   : > { %3575 = vmatpush3.msra.mxu0 %v1010_v50 }
 0x2c7   : > { %3576 = vmatprep.subr.mxu0 %v1008_v45 }
 0x2c8   : > { %3577 = vmatpush3.msra.mxu0 %v1008_v45  ;;  %v4351_v29 = vpop.permute.xlu1 %1186 }
 0x2c9   : > { %3578 = vmatprep.subr.mxu0 %v1006_v47 }
 0x2ca   : > { %3579 = vmatpush3.msra.mxu0 %v1006_v47 }
 0x2cb   : > { %3580 = vmatprep.subr.mxu0 %v1004_v41 }
 0x2cc   : > { %3581 = vmatpush3.msra.mxu0 %v1004_v41  ;;  %v1597_v38 = vpop.permute.xlu1 %1596 }
 0x2cd   : > { %3582 = vmatprep.subr.mxu0 %v1002_v51  ;;  %3658 = vmatprep.subr.msk.mxu1 %vm778_vm3, %v1597_v38 }
 0x2ce   : > { %3583 = vmatpush3.msra.mxu0 %v1002_v51  ;;  %3659 = vmatpush3.xpose.msk.msra.mxu1 %vm778_vm3, %v1597_v38 }
 0x2cf   : > { %3584 = vmatprep.subr.mxu0 %v1000_v42  ;;  %3660 = vmatprep.subr.msk.mxu1 %vm778_vm3, %v1595_v21 }
 0x2d0   : > { %3585 = vmatpush3.msra.mxu0 %v1000_v42 }
 0x2d1   : > { %3586 = vmatprep.subr.mxu0 %v998_v52 }
 0x2d2   : > { %3587 = vmatpush3.msra.mxu0 %v998_v52  ;;  %3661 = vmatpush3.xpose.msk.msra.mxu1 %vm778_vm3, %v1595_v21 }
 0x2d3   : > { %3600 = vmatprep.subr.msk.mxu0 %vm778_vm3, %v4331_v43  ;;  %3662 = vmatprep.subr.msk.mxu1 %vm778_vm3, %v1593_v46 }
 0x2d6   : > { %3663 = vmatpush3.xpose.msk.msra.mxu1 %vm778_vm3, %v1593_v46 }
 0x373   : > { %v3562_v53 = vpop.f32.mrf.mxu1 }
 0x374   : > { %v920_v54 = vsel %vm916_vm4, %v3562_v53, -inf }
 0x375   : > { %921 = vmax.xlane.f32.xlu1 %v920_v54  ;;  %v877_v55 = vpop.f32.mrf.mxu1 }
 0x376   : > { %v917_v39 = vsel %vm916_vm4, %v877_v55, -inf }
 0x377   : > { %918 = vmax.xlane.f32.xlu0 %v917_v39  ;;  %v4367_v48 = vpop.f32.mrf.mxu1 }
 0x378   : > { %v926_v60 = vsel %vm916_vm4, %v4367_v48, -inf }
 0x379   : > { %v4369_v56 = vpop.f32.mrf.mxu1 }
 0x37a   : > { %v923_v58 = vsel %vm916_vm4, %v4369_v56, -inf }
 0x37b   : > { %v4371_v57 = vpop.f32.mrf.mxu1 }
 0x37c   : > { %v932_v61 = vsel %vm916_vm4, %v4371_v57, -inf }
 0x37d   : > { %v4375_v59 = vpop.f32.mrf.mxu1 }
 0x37e   : > { %v929_v49 = vsel %vm916_vm4, %v4375_v59, -inf }
 0x37f   : > { %v4383_v62 = vpop.f32.mrf.mxu1 }
 0x380   : > { %v938_v63 = vsel %vm916_vm4, %v4383_v62, -inf }
 0x381   : > { %v4401_v0 = vpop.f32.mrf.mxu1 }
 0x382   : > { %v935_v1 = vsel %vm916_vm4, %v4401_v0, -inf }
 0x386   : > { %1160 = vrot.lane.b32.xlu1 %v4281_v26, %s4066_s19 }
 0x38d   : > { %1158 = vrot.lane.b32.xlu0 %v4262_v16, %s4066_s19 }
 0x3aa   : > { %924 = vmax.xlane.f32.xlu1 %v923_v58 }
 0x3ac   : > { %927 = vmax.xlane.f32.xlu0 %v926_v60 }
 0x3ae   : > { %930 = vmax.xlane.f32.xlu1 %v929_v49 }
 0x3b0   : > { %933 = vmax.xlane.f32.xlu0 %v932_v61 }
 0x3b4   : > { %939 = vmax.xlane.f32.xlu0 %v938_v63 }
 0x3bf   : > { %1162 = vrot.lane.b32.xlu1 %v4288_v30, %s4066_s19 }
 0x3ca   : > { %1590 = vrot.lane.b32.xlu0 %v4275_v24, %s4065_s18 }
 0x3ce   : > { %1164 = vrot.lane.b32.xlu0 %v4275_v24, %s4066_s19 }
 0x3d2   : > { %1166 = vrot.lane.b32.xlu0 %v4284_v27, %s4066_s19 }
 0x3d6   : > { %1586 = vrot.lane.b32.xlu0 %v4281_v26, %s4065_s18 }
 0x3da   : > { %1172 = vrot.lane.b32.xlu0 %v4269_v22, %s4066_s19 }
 0x3de   : > { %1568 = vrot.lane.b32.xlu0 %v4262_v16, %s4067_s20 }
 0x3e2   : > { %1572 = vrot.lane.b32.xlu0 %v4288_v30, %s4067_s20 }
 0x3e3   : > { %936 = vmax.xlane.f32.xlu1 %v935_v1 }
 0x3e6   : > { %1576 = vrot.lane.b32.xlu0 %v4284_v27, %s4067_s20 }
 0x3ea   : > { %1580 = vrot.lane.b32.xlu0 %v4272_v23, %s4067_s20 }
 0x3ee   : > { %1421 = vrot.lane.b32.xlu0 %v4269_v22, %s4068_s21 }
 0x3f2   : > { %1417 = vrot.lane.b32.xlu0 %v4278_v25, %s4068_s21 }
 0x3f4   : > { %1588 = vrot.lane.b32.xlu1 %v4288_v30, %s4065_s18 }
 0x3f6   : > { %1409 = vrot.lane.b32.xlu0 %v4281_v26, %s4068_s21 }
 0x3f8   : > { %1168 = vrot.lane.b32.xlu1 %v4278_v25, %s4066_s19 }
 0x3fa   : > { %1831 = vrot.lane.b32.xlu0 %v4269_v22, %s4069_s22 }
 0x3fc   : > { %1170 = vrot.lane.b32.xlu1 %v4272_v23, %s4066_s19 }
 0x3fe   : > { %1827 = vrot.lane.b32.xlu0 %v4278_v25, %s4069_s22  ;;  %v922_v7 = vpop.xlane.xlu1 %921 }
 0x3ff   : > { %v942_v8 = vsub.f32 %v3562_v53, %v922_v7 }
 0x400   : > { %v919_v9 = vpop.xlane.xlu0 %918  ;;  %1584 = vrot.lane.b32.xlu1 %v4262_v16, %s4065_s18 }
 0x401   : > { %v941_v10 = vsub.f32 %v877_v55, %v919_v9  ;;  %v951_v11 = vmul.f32 1.442695, %v942_v8 }
 0x402   : > { %1825 = vrot.lane.b32.xlu0 %v4284_v27, %s4069_s22  ;;  %v4482_v15 = vpop.permute.xlu1 %1160 }
 0x403   : > { %v949_v12 = vmul.f32 1.442695, %v941_v10 }
 0x404   : > { %1570 = vrot.lane.b32.xlu1 %v4281_v26, %s4067_s20  ;;  %v4486_v17 = vpop.permute.xlu0 %1158 }
 0x405   : > { %3891 = vpow2.f32 %v949_v12 }
 0x406   : > { %3893 = vpow2.f32 %v951_v11  ;;  %1821 = vrot.lane.b32.xlu0 %v4288_v30, %s4069_s22 }
 0x408   : > { %1574 = vrot.lane.b32.xlu1 %v4275_v24, %s4067_s20 }
 0x40c   : > { %1578 = vrot.lane.b32.xlu1 %v4278_v25, %s4067_s20 }
 0x410   : > { %1582 = vrot.lane.b32.xlu1 %v4269_v22, %s4067_s20  ;;  %s440_s20 = scalar_lea.vmem %s5258_s13, %s3334_s27 }
 0x412   : > { %v4441_v13 = vpop.eup %3891 }
 0x413   : > { %v4443_v14 = vpop.eup %3893  ;;  %3588 = vmatprep.mubr.msk.f32.mxu0 %vm916_vm4, %v4441_v13 }
 0x414   : > { %1419 = vrot.lane.b32.xlu1 %v4272_v23, %s4068_s21  ;;  %3589 = vmatmul.mubr.msk.f32.vlgmr.msra.gmra.mxu0 %vm916_vm4, %v4443_v14 }
 0x415   : > { %3601 = vmatpush3.xpose.msk.msra.mxu0 %vm778_vm3, %v4331_v43 }
 0x416   : > { %3602 = vmatprep.subr.msk.mxu0 %vm778_vm3, %v4351_v29 }
 0x418   : > { %1415 = vrot.lane.b32.xlu1 %v4284_v27, %s4068_s21 }
 0x419   : > { %3603 = vmatpush3.xpose.msk.msra.mxu0 %vm778_vm3, %v4351_v29 }
 0x41a   : > { %3604 = vmatprep.subr.msk.mxu0 %vm778_vm3, %v1185_v2 }
 0x41c   : > { %1413 = vrot.lane.b32.xlu1 %v4275_v24, %s4068_s21 }
 0x41d   : > { %3605 = vmatpush3.xpose.msk.msra.mxu0 %vm778_vm3, %v1185_v2 }
 0x41e   : > { %3606 = vmatprep.subr.msk.mxu0 %vm778_vm3, %v4337_v44 }
 0x420   : > { %1411 = vrot.lane.b32.xlu1 %v4288_v30, %s4068_s21 }
 0x421   : > { %3607 = vmatpush3.xpose.msk.msra.mxu0 %vm778_vm3, %v4337_v44 }
 0x422   : > { %3608 = vmatprep.subr.msk.mxu0 %vm778_vm3, %v1181_v3 }
 0x424   : > { %1407 = vrot.lane.b32.xlu1 %v4262_v16, %s4068_s21 }
 0x425   : > { %3609 = vmatpush3.xpose.msk.msra.mxu0 %vm778_vm3, %v1181_v3 }
 0x426   : > { %3610 = vmatprep.subr.msk.mxu0 %vm778_vm3, %v1179_v4 }
 0x428   : > { %1829 = vrot.lane.b32.xlu1 %v4272_v23, %s4069_s22 }
 0x429   : > { %3611 = vmatpush3.xpose.msk.msra.mxu0 %vm778_vm3, %v1179_v4 }
 0x42a   : > { %3612 = vmatprep.subr.msk.mxu0 %vm778_vm3, %v1177_v5 }
 0x42c   : > { %1823 = vrot.lane.b32.xlu1 %v4275_v24, %s4069_s22 }
 0x42d   : > { %3613 = vmatpush3.xpose.msk.msra.mxu0 %vm778_vm3, %v1177_v5 }
 0x42e   : > { %3614 = vmatprep.subr.msk.mxu0 %vm778_vm3, %v1175_v6 }
 0x430   : > { %1819 = vrot.lane.b32.xlu1 %v4281_v26, %s4069_s22 }
 0x431   : > { %3615 = vmatpush3.xpose.msk.msra.mxu0 %vm778_vm3, %v1175_v6 }
 0x433   : > { %v925_v18 = vpop.xlane.xlu1 %924 }
 0x434   : > { %v943_v19 = vsub.f32 %v4369_v56, %v925_v18 }
 0x435   : > { %v928_v31 = vpop.xlane.xlu0 %927 }
 0x436   : > { %v953_v32 = vmul.f32 1.442695, %v943_v19  ;;  %v944_v33 = vsub.f32 %v4367_v48, %v928_v31 }
 0x437   : > { %v931_v34 = vpop.xlane.xlu1 %930 }
 0x438   : > { %3895 = vpow2.f32 %v953_v32  ;;  %v955_v35 = vmul.f32 1.442695, %v944_v33  ;;  %v945_v36 = vsub.f32 %v4375_v59, %v931_v34 }
 0x439   : > { %v934_v37 = vpop.xlane.xlu0 %933 }
 0x43a   : > { %3897 = vpow2.f32 %v955_v35  ;;  %v957_v20 = vmul.f32 1.442695, %v945_v36  ;;  %v946_v40 = vsub.f32 %v4371_v57, %v934_v37 }
 0x43b   : > { %v1163_v55 = vpop.permute.xlu1 %1162 }
 0x43c   : > { %3899 = vpow2.f32 %v957_v20  ;;  %v959_v41 = vmul.f32 1.442695, %v946_v40 }
 0x43d   : > { %v940_v42 = vpop.xlane.xlu0 %939 }
 0x43e   : > { %3901 = vpow2.f32 %v959_v41  ;;  %v948_v39 = vsub.f32 %v4383_v62, %v940_v42 }
 0x440   : > { %v963_v57 = vmul.f32 1.442695, %v948_v39 }
 0x441   : > { %v1591_v43 = vpop.permute.xlu0 %1590 }
 0x442   : > { %3664 = vmatprep.subr.msk.mxu1 %vm778_vm3, %v1591_v43 }
 0x443   : > { %3665 = vmatpush3.xpose.msk.msra.mxu1 %vm778_vm3, %v1591_v43 }
 0x445   : > { %v4495_v44 = vpop.eup %3895  ;;  %v1165_v28 = vpop.permute.xlu0 %1164 }
 0x446   : > { %3591 = vmatprep.mubr.msk.f32.mxu0 %vm916_vm4, %v4495_v44 }
 0x447   : > { %v4499_v21 = vpop.eup %3897 }
 0x448   : > { %3592 = vmatmul.mubr.msk.f32.gmra.mxu0 %vm916_vm4, %v4499_v21 }
 0x449   : > { %v4503_v45 = vpop.eup %3899  ;;  %v1167_v46 = vpop.permute.xlu0 %1166 }
 0x44a   : > { %3594 = vmatprep.mubr.msk.f32.mxu0 %vm916_vm4, %v4503_v45 }
 0x44b   : > { %v4507_v47 = vpop.eup %3901 }
 0x44c   : > { %3595 = vmatmul.mubr.msk.f32.gmra.mxu0 %vm916_vm4, %v4507_v47 }
 0x44d   : > { %v1587_v50 = vpop.permute.xlu0 %1586 }
 0x451   : > { %v1173_v29 = vpop.permute.xlu0 %1172 }
 0x455   : > { %v1569_v51 = vpop.permute.xlu0 %1568 }
 0x456   : > { %3672 = vmatprep.mubr.msk.f32.mxu1 %vm778_vm3, %v1569_v51 }
 0x459   : > { %v1573_v38 = vpop.permute.xlu0 %1572 }
 0x45d   : > { %v1577_v52 = vpop.permute.xlu0 %1576 }
 0x461   : > { %v1581_v53 = vpop.permute.xlu0 %1580 }
 0x465   : > { %v1422_v54 = vpop.permute.xlu0 %1421 }
 0x466   : > { %3628 = vmatprep.subr.mxu0 %v1422_v54 }
 0x469   : > { %v1418_v5 = vpop.permute.xlu0 %1417 }
 0x46c   : > { %v937_v48 = vpop.xlane.xlu1 %936 }
 0x46d   : > { %v947_v56 = vsub.f32 %v4401_v0, %v937_v48  ;;  %v1410_v8 = vpop.permute.xlu0 %1409 }
 0x46f   : > { %v961_v58 = vmul.f32 1.442695, %v947_v56 }
 0x470   : > { %v1589_v59 = vpop.permute.xlu1 %1588 }
 0x471   : > { %3903 = vpow2.f32 %v961_v58  ;;  %3666 = vmatprep.subr.msk.mxu1 %vm778_vm3, %v1589_v59  ;;  %v4545_v11 = vpop.permute.xlu0 %1831 }
 0x472   : > { %3905 = vpow2.f32 %v963_v57  ;;  %3667 = vmatpush3.xpose.msk.msra.mxu1 %vm778_vm3, %v1589_v59 }
 0x473   : > { %3668 = vmatprep.subr.msk.mxu1 %vm778_vm3, %v1587_v50 }
 0x474   : > { %v1169_v60 = vpop.permute.xlu1 %1168 }
 0x476   : > { %3669 = vmatpush3.xpose.msk.msra.mxu1 %vm778_vm3, %v1587_v50 }
 0x478   : > { %v1171_v49 = vpop.permute.xlu1 %1170 }
 0x47c   : > { %v1585_v61 = vpop.permute.xlu1 %1584 }
 0x47d   : > { %3670 = vmatprep.subr.msk.mxu1 %vm778_vm3, %v1585_v61 }
 0x47e   : > { %v4519_v62 = vpop.eup %3903  ;;  %3671 = vmatpush3.xpose.msk.msra.mxu1 %vm778_vm3, %v1585_v61 }
 0x47f   : > { %v4522_v63 = vpop.eup %3905  ;;  %3597 = vmatprep.mubr.msk.f32.mxu0 %vm916_vm4, %v4519_v62 }
 0x480   : > { %3598 = vmatmul.mubr.msk.f32.gmra.mxu0 %vm916_vm4, %v4522_v63  ;;  %v1571_v0 = vpop.permute.xlu1 %1570 }
 0x481   : > { %3616 = vmatprep.mubr.msk.f32.mxu0 %vm778_vm3, %v4486_v17  ;;  %3673 = vmatmul.mubr.msk.f32.vlgmr.msra.gmra.mxu1 %vm778_vm3, %v1571_v0 }
 0x482   : > { %3675 = vmatprep.mubr.msk.f32.mxu1 %vm778_vm3, %v1573_v38 }
 0x484   : > { %3617 = vmatmul.mubr.msk.f32.vlgmr.msra.gmra.mxu0 %vm778_vm3, %v4482_v15  ;;  %v1575_v1 = vpop.permute.xlu1 %1574 }
 0x485   : > { %3629 = vmatpush3.msra.mxu0 %v1422_v54  ;;  %3619 = vmatprep.mubr.msk.f32.mxu0 %vm778_vm3, %v1163_v55 }
 0x486   : > { %3676 = vmatmul.mubr.msk.f32.gmra.mxu1 %vm778_vm3, %v1575_v1 }
 0x487   : > { %3678 = vmatprep.mubr.msk.f32.mxu1 %vm778_vm3, %v1577_v52 }
 0x488   : > { %3620 = vmatmul.mubr.msk.f32.gmra.mxu0 %vm778_vm3, %v1165_v28  ;;  %v1579_v2 = vpop.permute.xlu1 %1578 }
 0x489   : > { %3622 = vmatprep.mubr.msk.f32.mxu0 %vm778_vm3, %v1167_v46 }
 0x48a   : > { %3679 = vmatmul.mubr.msk.f32.gmra.mxu1 %vm778_vm3, %v1579_v2 }
 0x48b   : > { %3681 = vmatprep.mubr.msk.f32.mxu1 %vm778_vm3, %v1581_v53 }
 0x48c   : > { %3623 = vmatmul.mubr.msk.f32.gmra.mxu0 %vm778_vm3, %v1169_v60  ;;  %v1583_v3 = vpop.permute.xlu1 %1582 }
 0x48d   : > { %3625 = vmatprep.mubr.msk.f32.mxu0 %vm778_vm3, %v1171_v49 }
 0x48e   : > { %3682 = vmatmul.mubr.msk.f32.gmra.mxu1 %vm778_vm3, %v1583_v3 }
 0x490   : > { %3626 = vmatmul.mubr.msk.f32.gmra.mxu0 %vm778_vm3, %v1173_v29  ;;  %v1420_v4 = vpop.permute.xlu1 %1419 }
 0x491   : > { %3630 = vmatprep.subr.mxu0 %v1420_v4 }
 0x492   : > { %3631 = vmatpush3.msra.mxu0 %v1420_v4 }
 0x493   : > { %3632 = vmatprep.subr.mxu0 %v1418_v5 }
 0x494   : > { %3633 = vmatpush3.msra.mxu0 %v1418_v5  ;;  %v1416_v6 = vpop.permute.xlu1 %1415 }
 0x495   : > { %3634 = vmatprep.subr.mxu0 %v1416_v6 }
 0x496   : > { %3635 = vmatpush3.msra.mxu0 %v1416_v6 }
 0x498   : > { %v1414_v7 = vpop.permute.xlu1 %1413 }
 0x499   : > { %3636 = vmatprep.subr.mxu0 %v1414_v7 }
 0x49a   : > { %3637 = vmatpush3.msra.mxu0 %v1414_v7 }
 0x49c   : > { %v1412_v9 = vpop.permute.xlu1 %1411 }
 0x49d   : > { %3638 = vmatprep.subr.mxu0 %v1412_v9 }
 0x49e   : > { %3639 = vmatpush3.msra.mxu0 %v1412_v9 }
 0x49f   : > { %3640 = vmatprep.subr.mxu0 %v1410_v8 }
 0x4a0   : > { %3641 = vmatpush3.msra.mxu0 %v1410_v8  ;;  %v1408_v10 = vpop.permute.xlu1 %1407 }
 0x4a1   : > { %3642 = vmatprep.subr.mxu0 %v1408_v10 }
 0x4a2   : > { %3643 = vmatpush3.msra.mxu0 %v1408_v10 }
 0x4a3   : > { %3684 = vmatprep.subr.mxu0 %v4545_v11 }
 0x4d4   : > { %v4548_v12 = vpop.f32.mrf.mxu0 }
 0x4d6   : > { %v4550_v15 = vpop.f32.mrf.mxu0 }
 0x508   : > { %v4552_v17 = vpop.f32.mrf.mxu0 }
 0x50a   : > { %v4554_v18 = vpop.f32.mrf.mxu0 }
 0x50c   : > { %v4556_v19 = vpop.f32.mrf.mxu0 }
 0x50e   : > { %v4558_v31 = vpop.f32.mrf.mxu0 }
 0x540   : > { %v4560_v32 = vpop.f32.mrf.mxu0 }
 0x541   : > { %v4562_v33 = vpop.f32.mrf.mxu1 }
 0x542   : > { %v4564_v34 = vpop.f32.mrf.mxu0  ;;  %v1740_v35 = vsel %vm916_vm4, %v4562_v33, -inf }
 0x543   : > { %1741 = vmax.xlane.f32.xlu0 %v1740_v35  ;;  %v4568_v36 = vpop.f32.mrf.mxu1 }
 0x544   : > { %v4570_v37 = vpop.f32.mrf.mxu0  ;;  %v1737_v20 = vsel %vm916_vm4, %v4568_v36, -inf }
 0x545   : > { %1738 = vmax.xlane.f32.xlu1 %v1737_v20  ;;  %v1330_v39 = vsel %vm916_vm4, %v4570_v37, -inf }
 0x546   : > { %v4574_v40 = vpop.f32.mrf.mxu1  ;;  %v4576_v41 = vpop.f32.mrf.mxu0 }
 0x547   : > { %v1746_v42 = vsel %vm916_vm4, %v4574_v40, -inf  ;;  %v1327_v54 = vsel %vm916_vm4, %v4576_v41, -inf }
 0x548   : > { %1747 = vmax.xlane.f32.xlu0 %v1746_v42  ;;  %v4580_v43 = vpop.f32.mrf.mxu1  ;;  %v4582_v28 = vpop.f32.mrf.mxu0 }
 0x549   : > { %v1743_v46 = vsel %vm916_vm4, %v4580_v43, -inf  ;;  %v1336_v56 = vsel %vm916_vm4, %v4582_v28, -inf }
 0x54a   : > { %1744 = vmax.xlane.f32.xlu1 %v1743_v46  ;;  %v4586_v50 = vpop.f32.mrf.mxu1  ;;  %v4590_v51 = vpop.f32.mrf.mxu0 }
 0x54b   : > { %v1752_v29 = vsel %vm916_vm4, %v4586_v50, -inf  ;;  %v1333_v59 = vsel %vm916_vm4, %v4590_v51, -inf }
 0x54c   : > { %1753 = vmax.xlane.f32.xlu0 %v1752_v29  ;;  %v4592_v38 = vpop.f32.mrf.mxu1  ;;  %v4600_v55 = vpop.f32.mrf.mxu0 }
 0x54d   : > { %v1749_v52 = vsel %vm916_vm4, %v4592_v38, -inf  ;;  %v1342_v49 = vsel %vm916_vm4, %v4600_v55, -inf }
 0x54e   : > { %1750 = vmax.xlane.f32.xlu1 %v1749_v52  ;;  %v4596_v53 = vpop.f32.mrf.mxu1  ;;  %v4608_v57 = vpop.f32.mrf.mxu0 }
 0x54f   : > { %v1339_v61 = vsel %vm916_vm4, %v4608_v57, -inf  ;;  %v1758_v3 = vsel %vm916_vm4, %v4596_v53, -inf }
 0x550   : > { %1328 = vmax.xlane.f32.xlu0 %v1327_v54  ;;  %v4604_v48 = vpop.f32.mrf.mxu1  ;;  %v4614_v60 = vpop.f32.mrf.mxu0 }
 0x551   : > { %v1755_v58 = vsel %vm916_vm4, %v4604_v48, -inf  ;;  %v1348_v1 = vsel %vm916_vm4, %v4614_v60, -inf }
 0x552   : > { %1331 = vmax.xlane.f32.xlu1 %v1330_v39  ;;  %v4620_v0 = vpop.f32.mrf.mxu0 }
 0x553   : > { %v1345_v2 = vsel %vm916_vm4, %v4620_v0, -inf }
 0x554   : > { %1337 = vmax.xlane.f32.xlu0 %v1336_v56 }
 0x556   : > { %1756 = vmax.xlane.f32.xlu1 %v1755_v58 }
 0x558   : > { %1334 = vmax.xlane.f32.xlu0 %v1333_v59 }
 0x55a   : > { %1343 = vmax.xlane.f32.xlu1 %v1342_v49 }
 0x55c   : > { %1340 = vmax.xlane.f32.xlu0 %v1339_v61 }
 0x55e   : > { %1349 = vmax.xlane.f32.xlu1 %v1348_v1 }
 0x560   : > { %1346 = vmax.xlane.f32.xlu0 %v1345_v2 }
 0x564   : > { %1759 = vmax.xlane.f32.xlu0 %v1758_v3 }
 0x56f   : > { %2008 = vrot.lane.b32.xlu1 %v4269_v22, %s4070_s23 }
 0x573   : > { %2006 = vrot.lane.b32.xlu1 %v4272_v23, %s4070_s23 }
 0x577   : > { %2002 = vrot.lane.b32.xlu1 %v4284_v27, %s4070_s23 }
 0x57a   : > { %1817 = vrot.lane.b32.xlu0 %v4262_v16, %s4069_s22 }
 0x57b   : > { %1998 = vrot.lane.b32.xlu1 %v4288_v30, %s4070_s23 }
 0x57e   : > { %2004 = vrot.lane.b32.xlu0 %v4278_v25, %s4070_s23 }
 0x57f   : > { %1994 = vrot.lane.b32.xlu1 %v4262_v16, %s4070_s23 }
 0x582   : > { %2000 = vrot.lane.b32.xlu0 %v4275_v24, %s4070_s23 }
 0x583   : > { %1980 = vrot.lane.b32.xlu1 %v4281_v26, %s4071_s24 }
 0x586   : > { %1996 = vrot.lane.b32.xlu0 %v4281_v26, %s4070_s23  ;;  %v1830_v26 = vpop.permute.xlu1 %1829  ;;  %s4075_s23 = smov 24  }
 0x587   : > { %1984 = vrot.lane.b32.xlu1 %v4275_v24, %s4071_s24 }
 0x58a   : > { %1978 = vrot.lane.b32.xlu0 %v4262_v16, %s4071_s24  ;;  %v4658_v16 = vpop.permute.xlu0 %1827 }
 0x58b   : > { %1988 = vrot.lane.b32.xlu1 %v4278_v25, %s4071_s24 }
 0x58e   : > { %1982 = vrot.lane.b32.xlu0 %v4288_v30, %s4071_s24  ;;  %v4660_v4 = vpop.permute.xlu0 %1825 }
 0x58f   : > { %1992 = vrot.lane.b32.xlu1 %v4269_v22, %s4071_s24 }
 0x592   : > { %1986 = vrot.lane.b32.xlu0 %v4284_v27, %s4071_s24 }
 0x593   : > { %2239 = vrot.lane.b32.xlu1 %v4272_v23, %s4072_s28 }
 0x596   : > { %1990 = vrot.lane.b32.xlu0 %v4272_v23, %s4071_s24  ;;  %v4662_v23 = vpop.permute.xlu1 %1823 }
 0x597   : > { %2237 = vrot.lane.b32.xlu1 %v4278_v25, %s4072_s28  ;;  %v4664_v25 = vpop.permute.xlu0 %1821 }
 0x59a   : > { %2241 = vrot.lane.b32.xlu0 %v4269_v22, %s4072_s28  ;;  %v4666_v5 = vpop.permute.xlu1 %1819 }
 0x59b   : > { %2235 = vrot.lane.b32.xlu1 %v4284_v27, %s4072_s28 }
 0x59e   : > { %2233 = vrot.lane.b32.xlu0 %v4275_v24, %s4072_s28 }
 0x59f   : > { %2231 = vrot.lane.b32.xlu1 %v4288_v30, %s4072_s28 }
 0x5cc   : > { %v1742_v22 = vpop.xlane.xlu0 %1741 }
 0x5ce   : > { %v1739_v6 = vpop.xlane.xlu1 %1738 }
 0x5d1   : > { %v1748_v27 = vpop.xlane.xlu0 %1747 }
 0x5d3   : > { %v1745_v7 = vpop.xlane.xlu1 %1744 }
 0x5d5   : > { %v4668_v8 = vpop.xlane.xlu0 %1753 }
 0x5d7   : > { %v4670_v24 = vpop.xlane.xlu1 %1750 }
 0x5d9   : > { %v1329_v30 = vpop.xlane.xlu0 %1328 }
 0x5da   : > { %v1351_v9 = vsub.f32 %v4576_v41, %v1329_v30 }
 0x5db   : > { %v1332_v10 = vpop.xlane.xlu1 %1331 }
 0x5dc   : > { %v1359_v35 = vmul.f32 1.442695, %v1351_v9  ;;  %v1352_v20 = vsub.f32 %v4570_v37, %v1332_v10 }
 0x5dd   : > { %v1338_v42 = vpop.xlane.xlu0 %1337 }
 0x5de   : > { %3907 = vpow2.f32 %v1359_v35  ;;  %v1361_v46 = vmul.f32 1.442695, %v1352_v20  ;;  %v1354_v52 = vsub.f32 %v4582_v28, %v1338_v42  ;;  %v1761_v28 = vsub.f32 %v4568_v36, %v1739_v6 }
 0x5df   : > { %v4674_v29 = vpop.xlane.xlu1 %1756  ;;  %v1763_v36 = vsub.f32 %v4580_v43, %v1745_v7 }
 0x5e0   : > { %3909 = vpow2.f32 %v1361_v46  ;;  %v1365_v58 = vmul.f32 1.442695, %v1354_v52  ;;  %v1765_v46 = vsub.f32 %v4592_v38, %v4670_v24 }
 0x5e1   : > { %v1335_v54 = vpop.xlane.xlu0 %1334  ;;  %v1773_v42 = vmul.f32 1.442695, %v1763_v36 }
 0x5e2   : > { %v1353_v39 = vsub.f32 %v4590_v51, %v1335_v54 }
 0x5e3   : > { %v1344_v56 = vpop.xlane.xlu1 %1343 }
 0x5e4   : > { %v1363_v59 = vmul.f32 1.442695, %v1353_v39  ;;  %v1356_v41 = vsub.f32 %v4600_v55, %v1344_v56  ;;  %v1762_v55 = vsub.f32 %v4562_v33, %v1742_v22  ;;  %v1764_v22 = vsub.f32 %v4574_v40, %v1748_v27 }
 0x5e5   : > { %v1341_v49 = vpop.xlane.xlu0 %1340  ;;  %v1766_v40 = vsub.f32 %v4586_v50, %v4668_v8  ;;  %v1767_v27 = vsub.f32 %v4604_v48, %v4674_v29 }
 0x5e6   : > { %3911 = vpow2.f32 %v1363_v59  ;;  %v1355_v37 = vsub.f32 %v4608_v57, %v1341_v49  ;;  %v1369_v1 = vmul.f32 1.442695, %v1356_v41  ;;  %v1771_v33 = vmul.f32 1.442695, %v1762_v55 }
 0x5e7   : > { %v1350_v61 = vpop.xlane.xlu1 %1349  ;;  %3913 = vpow2.f32 %v1365_v58  ;;  %v1775_v52 = vmul.f32 1.442695, %v1764_v22  ;;  %v1779_v24 = vmul.f32 1.442695, %v1766_v40 }
 0x5e8   : > { %v1367_v2 = vmul.f32 1.442695, %v1355_v37  ;;  %v1358_v3 = vsub.f32 %v4614_v60, %v1350_v61  ;;  %v1769_v60 = vmul.f32 1.442695, %v1761_v28 }
 0x5e9   : > { %v1347_v30 = vpop.xlane.xlu0 %1346 }
 0x5ea   : > { %3915 = vpow2.f32 %v1367_v2  ;;  %v1357_v51 = vsub.f32 %v4620_v0, %v1347_v30  ;;  %v1373_v57 = vmul.f32 1.442695, %v1358_v3 }
 0x5eb   : > { %v4683_v9 = vpop.eup %3907  ;;  %v4685_v10 = vpop.permute.xlu1 %2008  ;;  %3917 = vpow2.f32 %v1369_v1 }
 0x5ec   : > { %v1371_v35 = vmul.f32 1.442695, %v1357_v51  ;;  %3644 = vmatprep.mubr.msk.f32.mxu0 %vm916_vm4, %v4683_v9 }
 0x5ed   : > { %v4690_v20 = vpop.eup %3909  ;;  %v1760_v6 = vpop.xlane.xlu0 %1759 }
 0x5ee   : > { %3919 = vpow2.f32 %v1371_v35  ;;  %3645 = vmatmul.mubr.msk.f32.vlgmr.msra.gmra.mxu0 %vm916_vm4, %v4690_v20  ;;  %v1768_v54 = vsub.f32 %v4596_v53, %v1760_v6 }
 0x5ef   : > { %3685 = vmatpush3.msra.mxu0 %v4545_v11  ;;  %v4696_v0 = vpop.permute.xlu1 %2006  ;;  %3921 = vpow2.f32 %v1373_v57 }
 0x5f0   : > { %3686 = vmatprep.subr.mxu0 %v1830_v26  ;;  %3923 = vpow2.f32 %v1769_v60  ;;  %v1783_v39 = vmul.f32 1.442695, %v1768_v54 }
 0x5f1   : > { %3687 = vmatpush3.msra.mxu0 %v1830_v26  ;;  %v1818_v43 = vpop.permute.xlu0 %1817  ;;  %3925 = vpow2.f32 %v1771_v33  ;;  %v1777_v26 = vmul.f32 1.442695, %v1765_v46 }
 0x5f2   : > { %3688 = vmatprep.subr.mxu0 %v4658_v16  ;;  %3927 = vpow2.f32 %v1773_v42 }
 0x5f3   : > { %v4702_v7 = vpop.eup %3911  ;;  %3689 = vmatpush3.msra.mxu0 %v4658_v16  ;;  %v4705_v11 = vpop.permute.xlu1 %2002  ;;  %3929 = vpow2.f32 %v1775_v52 }
 0x5f4   : > { %3690 = vmatprep.subr.mxu0 %v4660_v4  ;;  %3647 = vmatprep.mubr.msk.f32.mxu0 %vm916_vm4, %v4702_v7  ;;  %v4712_v38 = vpop.eup %3913  ;;  %3931 = vpow2.f32 %v1777_v26 }
 0x5f5   : > { %3691 = vmatpush3.msra.mxu0 %v4660_v4  ;;  %v2005_v16 = vpop.permute.xlu0 %2004  ;;  %v1781_v4 = vmul.f32 1.442695, %v1767_v27  ;;  %3933 = vpow2.f32 %v1779_v24 }
 0x5f6   : > { %3648 = vmatmul.mubr.msk.f32.gmra.mxu0 %vm916_vm4, %v4712_v38  ;;  %3692 = vmatprep.subr.mxu0 %v4662_v23 }
 0x5f7   : > { %v4720_v50 = vpop.eup %3915  ;;  %3693 = vmatpush3.msra.mxu0 %v4662_v23  ;;  %v4723_v8 = vpop.permute.xlu1 %1998  ;;  %3935 = vpow2.f32 %v1781_v4 }
 0x5f8   : > { %3694 = vmatprep.subr.mxu0 %v4664_v25  ;;  %3650 = vmatprep.mubr.msk.f32.mxu0 %vm916_vm4, %v4720_v50  ;;  %v4729_v48 = vpop.eup %3917  ;;  %3937 = vpow2.f32 %v1783_v39 }
 0x5f9   : > { %3695 = vmatpush3.msra.mxu0 %v4664_v25  ;;  %v2001_v29 = vpop.permute.xlu0 %2000 }
 0x5fa   : > { %3651 = vmatmul.mubr.msk.f32.gmra.mxu0 %vm916_vm4, %v4729_v48  ;;  %3696 = vmatprep.subr.mxu0 %v4666_v5 }
 0x5fb   : > { %v4735_v23 = vpop.eup %3919  ;;  %3697 = vmatpush3.msra.mxu0 %v4666_v5  ;;  %v4738_v53 = vpop.permute.xlu1 %1994 }
 0x5fc   : > { %3698 = vmatprep.subr.mxu0 %v1818_v43  ;;  %3653 = vmatprep.mubr.msk.f32.mxu0 %vm916_vm4, %v4735_v23  ;;  %v4742_v56 = vpop.eup %3921 }
 0x5fd   : > { %3699 = vmatpush3.msra.mxu0 %v1818_v43  ;;  %v1997_v25 = vpop.permute.xlu0 %1996  ;;  %v4744_v58 = vpop.eup %3923 }
 0x5fe   : > { %3654 = vmatmul.mubr.msk.f32.gmra.mxu0 %vm916_vm4, %v4742_v56  ;;  %3712 = vmatprep.subr.msk.mxu0 %vm778_vm3, %v4685_v10  ;;  %v4752_v59 = vpop.eup %3925 }
 0x5ff   : > { %3700 = vmatprep.mubr.msk.f32.mxu0 %vm916_vm4, %v4744_v58  ;;  %v1981_v5 = vpop.permute.xlu1 %1980  ;;  %v4754_v49 = vpop.eup %3927 }
 0x600   : > { %v4764_v61 = vpop.eup %3929 }
 0x601   : > { %v1979_v41 = vpop.permute.xlu0 %1978  ;;  %v4766_v2 = vpop.eup %3931 }
 0x602   : > { %3701 = vmatmul.mubr.msk.f32.vlgmr.msra.gmra.mxu0 %vm916_vm4, %v4752_v59  ;;  %v4775_v28 = vpop.eup %3933 }
 0x603   : > { %3713 = vmatpush3.xpose.msk.msra.mxu0 %vm778_vm3, %v4685_v10  ;;  %3703 = vmatprep.mubr.msk.f32.mxu0 %vm916_vm4, %v4754_v49  ;;  %v1985_v37 = vpop.permute.xlu1 %1984 }
 0x604   : > { %3714 = vmatprep.subr.msk.mxu0 %vm778_vm3, %v4696_v0  ;;  %v4777_v51 = vpop.eup %3935 }
 0x605   : > { %v1983_v1 = vpop.permute.xlu0 %1982  ;;  %v4786_v55 = vpop.eup %3937 }
 0x606   : > { %3704 = vmatmul.mubr.msk.f32.gmra.mxu0 %vm916_vm4, %v4764_v61 }
 0x607   : > { %3715 = vmatpush3.xpose.msk.msra.mxu0 %vm778_vm3, %v4696_v0  ;;  %3706 = vmatprep.mubr.msk.f32.mxu0 %vm916_vm4, %v4766_v2  ;;  %v1989_v3 = vpop.permute.xlu1 %1988 }
 0x608   : > { %3716 = vmatprep.subr.msk.mxu0 %vm778_vm3, %v2005_v16 }
 0x609   : > { %v1987_v30 = vpop.permute.xlu0 %1986 }
 0x60a   : > { %3707 = vmatmul.mubr.msk.f32.gmra.mxu0 %vm916_vm4, %v4775_v28 }
 0x60b   : > { %3717 = vmatpush3.xpose.msk.msra.mxu0 %vm778_vm3, %v2005_v16  ;;  %3709 = vmatprep.mubr.msk.f32.mxu0 %vm916_vm4, %v4777_v51  ;;  %v1993_v10 = vpop.permute.xlu1 %1992 }
 0x60c   : > { %3718 = vmatprep.subr.msk.mxu0 %vm778_vm3, %v4705_v11 }
 0x60d   : > { %v1991_v57 = vpop.permute.xlu0 %1990 }
 0x60e   : > { %3710 = vmatmul.mubr.msk.f32.gmra.mxu0 %vm916_vm4, %v4786_v55 }
 0x60f   : > { %3719 = vmatpush3.xpose.msk.msra.mxu0 %vm778_vm3, %v4705_v11  ;;  %3728 = vmatprep.mubr.msk.f32.mxu0 %vm778_vm3, %v1979_v41  ;;  %v2240_v35 = vpop.permute.xlu1 %2239 }
 0x610   : > { %3720 = vmatprep.subr.msk.mxu0 %vm778_vm3, %v2001_v29 }
 0x611   : > { %v2242_v60 = vpop.permute.xlu0 %2241 }
 0x612   : > { %3740 = vmatprep.subr.mxu1 %v2242_v60 }
 0x613   : > { %3721 = vmatpush3.xpose.msk.msra.mxu0 %vm778_vm3, %v2001_v29  ;;  %3741 = vmatpush3.msra.mxu1 %v2242_v60  ;;  %v2238_v36 = vpop.permute.xlu1 %2237 }
 0x614   : > { %3722 = vmatprep.subr.msk.mxu0 %vm778_vm3, %v4723_v8  ;;  %3742 = vmatprep.subr.mxu1 %v2240_v35 }
 0x615   : > { %3743 = vmatpush3.msra.mxu1 %v2240_v35  ;;  %v2234_v0 = vpop.permute.xlu0 %2233 }
 0x616   : > { %3744 = vmatprep.subr.mxu1 %v2238_v36 }
 0x617   : > { %3723 = vmatpush3.xpose.msk.msra.mxu0 %vm778_vm3, %v4723_v8  ;;  %3745 = vmatpush3.msra.mxu1 %v2238_v36  ;;  %v2236_v6 = vpop.permute.xlu1 %2235 }
 0x618   : > { %3724 = vmatprep.subr.msk.mxu0 %vm778_vm3, %v1997_v25  ;;  %3746 = vmatprep.subr.mxu1 %v2236_v6 }
 0x619   : > { %3747 = vmatpush3.msra.mxu1 %v2236_v6 }
 0x61a   : > { %3748 = vmatprep.subr.mxu1 %v2234_v0 }
 0x61b   : > { %3725 = vmatpush3.xpose.msk.msra.mxu0 %vm778_vm3, %v1997_v25  ;;  %3749 = vmatpush3.msra.mxu1 %v2234_v0  ;;  %v2232_v33 = vpop.permute.xlu1 %2231 }
 0x61c   : > { %3726 = vmatprep.subr.msk.mxu0 %vm778_vm3, %v4738_v53  ;;  %3750 = vmatprep.subr.mxu1 %v2232_v33 }
 0x61d   : > { %3751 = vmatpush3.msra.mxu1 %v2232_v33 }
 0x61f   : > { %3727 = vmatpush3.xpose.msk.msra.mxu0 %vm778_vm3, %v4738_v53 }
 0x622   : > { %3729 = vmatmul.mubr.msk.f32.vlgmr.msra.gmra.mxu0 %vm778_vm3, %v1981_v5 }
 0x623   : > { %3731 = vmatprep.mubr.msk.f32.mxu0 %vm778_vm3, %v1983_v1 }
 0x626   : > { %3732 = vmatmul.mubr.msk.f32.gmra.mxu0 %vm778_vm3, %v1985_v37 }
 0x627   : > { %3734 = vmatprep.mubr.msk.f32.mxu0 %vm778_vm3, %v1987_v30 }
 0x62a   : > { %3735 = vmatmul.mubr.msk.f32.gmra.mxu0 %vm778_vm3, %v1989_v3 }
 0x62b   : > { %3737 = vmatprep.mubr.msk.f32.mxu0 %vm778_vm3, %v1991_v57 }
 0x62e   : > { %3738 = vmatmul.mubr.msk.f32.gmra.mxu0 %vm778_vm3, %v1993_v10 }
 0x6ae   : > { %v4812_v22 = vpop.f32.mrf.mxu0 }
 0x6b0   : > { %v4814_v42 = vpop.f32.mrf.mxu0 }
 0x6b6   : > { %v4816_v46 = vpop.f32.mrf.mxu0 }
 0x6b8   : > { %v4818_v43 = vpop.f32.mrf.mxu0 }
 0x6ba   : > { %v4820_v11 = vpop.f32.mrf.mxu0 }
 0x6bc   : > { %v4822_v52 = vpop.f32.mrf.mxu0 }
 0x6be   : > { %v4824_v40 = vpop.f32.mrf.mxu0 }
 0x6c0   : > { %v4826_v26 = vpop.f32.mrf.mxu0 }
 0x6c2   : > { %v4828_v27 = vpop.f32.mrf.mxu0 }
 0x6c4   : > { %v4830_v16 = vpop.f32.mrf.mxu0 }
 0x6c6   : > { %v4832_v8 = vpop.f32.mrf.mxu0 }
 0x6c8   : > { %v4834_v24 = vpop.f32.mrf.mxu0 }
 0x6ca   : > { %v4836_v54 = vpop.f32.mrf.mxu0 }
 0x6cc   : > { %v4838_v4 = vpop.f32.mrf.mxu0 }
 0x6ce   : > { %v4840_v29 = vpop.f32.mrf.mxu0 }
 0x6d0   : > { %v4842_v53 = vpop.f32.mrf.mxu0 }
 0x6e2   : > { %v4844_v39 = vpop.f32.mrf.mxu0 }
 0x6e3   : > { %v2150_v25 = vsel %vm916_vm4, %v4844_v39, -inf }
 0x6e4   : > { %2151 = vmax.xlane.f32.xlu1 %v2150_v25  ;;  %v4848_v5 = vpop.f32.mrf.mxu0  ;;  %v4051_v25 = vld [vmem:[#allocation2] sm:$0xff] }
 0x6e5   : > { %v2147_v41 = vsel %vm916_vm4, %v4848_v5, -inf }
 0x6e6   : > { %2148 = vmax.xlane.f32.xlu0 %v2147_v41  ;;  %v4852_v37 = vpop.f32.mrf.mxu0  ;;  %v4052_v41 = vld [vmem:[#allocation2 + $0x8] sm:$0xff] }
 0x6e7   : > { %v2156_v3 = vsel %vm916_vm4, %v4852_v37, -inf }
 0x6e8   : > { %v4854_v1 = vpop.f32.mrf.mxu0 }
 0x6e9   : > { %v2153_v35 = vsel %vm916_vm4, %v4854_v1, -inf }
 0x6ea   : > { %2157 = vmax.xlane.f32.xlu0 %v2156_v3  ;;  %v4858_v30 = vpop.f32.mrf.mxu0  ;;  %v1378_v3 = vsel %vm916_vm4, %v4690_v20, 0.0  ;;  %v1390_v20 = vsel %vm916_vm4, %v4729_v48, 0.0  ;;  %v1791_v48 = vsel %vm916_vm4, %v4754_v49, 0.0  ;;  %v1803_v49 = vsel %vm916_vm4, %v4777_v51, 0.0 }
 0x6eb   : > { %v2162_v10 = vsel %vm916_vm4, %v4858_v30, -inf }
 0x6ec   : > { %2163 = vmax.xlane.f32.xlu1 %v2162_v10  ;;  %v4862_v57 = vpop.f32.mrf.mxu0  ;;  %v1384_v10 = vsel %vm916_vm4, %v4712_v38, 0.0  ;;  %v1788_v38 = vsel %vm916_vm4, %v4752_v59, 0.0  ;;  %v1806_v59 = vsel %vm916_vm4, %v4786_v55, 0.0 }
 0x6ed   : > { %v2159_v6 = vsel %vm916_vm4, %v4862_v57, -inf }
 0x6ee   : > { %2154 = vmax.xlane.f32.xlu0 %v2153_v35  ;;  %v4866_v60 = vpop.f32.mrf.mxu0  ;;  %v1375_v35 = vsel %vm916_vm4, %v4683_v9, 0.0  ;;  %v1800_v9 = vsel %vm916_vm4, %v4775_v28, 0.0  ;;  %v1387_v28 = vsel %vm916_vm4, %v4720_v50, 0.0 }
 0x6ef   : > { %v2168_v36 = vsel %vm916_vm4, %v4866_v60, -inf }
 0x6f0   : > { %2169 = vmax.xlane.f32.xlu1 %v2168_v36  ;;  %v4872_v0 = vpop.f32.mrf.mxu0  ;;  %v1794_v36 = vsel %vm916_vm4, %v4764_v61, 0.0  ;;  %v1381_v61 = vsel %vm916_vm4, %v4702_v7, 0.0  ;;  %v1797_v7 = vsel %vm916_vm4, %v4766_v2, 0.0 }
 0x6f1   : > { %v2165_v33 = vsel %vm916_vm4, %v4872_v0, -inf }
 0x6f2   : > { %2160 = vmax.xlane.f32.xlu0 %v2159_v6  ;;  %v1785_v6 = vsel %vm916_vm4, %v4744_v58, 0.0  ;;  %v1396_v58 = vsel %vm916_vm4, %v4742_v56, 0.0  ;;  %v1393_v56 = vsel %vm916_vm4, %v4735_v23, 0.0 }
 0x6f6   : > { %2166 = vmax.xlane.f32.xlu0 %v2165_v33 }
 0x701   : > { %2227 = vrot.lane.b32.xlu1 %v4051_v25, %s4072_s28 }
 0x70c   : > { %2229 = vrot.lane.b32.xlu0 %v4052_v41, %s4072_s28 }
 0x725   : > { %1379 = vadd.xlane.f32.xlu1 %v1378_v3 }
 0x729   : > { %1385 = vadd.xlane.f32.xlu1 %v1384_v10 }
 0x72b   : > { %1376 = vadd.xlane.f32.xlu0 %v1375_v35 }
 0x72d   : > { %1795 = vadd.xlane.f32.xlu1 %v1794_v36 }
 0x72f   : > { %1786 = vadd.xlane.f32.xlu0 %v1785_v6 }
 0x731   : > { %1391 = vadd.xlane.f32.xlu1 %v1390_v20 }
 0x733   : > { %1789 = vadd.xlane.f32.xlu0 %v1788_v38 }
 0x735   : > { %1801 = vadd.xlane.f32.xlu1 %v1800_v9 }
 0x737   : > { %1382 = vadd.xlane.f32.xlu0 %v1381_v61 }
 0x739   : > { %1397 = vadd.xlane.f32.xlu1 %v1396_v58 }
 0x73b   : > { %1792 = vadd.xlane.f32.xlu0 %v1791_v48 }
 0x73d   : > { %1807 = vadd.xlane.f32.xlu1 %v1806_v59 }
 0x73f   : > { %1388 = vadd.xlane.f32.xlu0 %v1387_v28 }
 0x743   : > { %1798 = vadd.xlane.f32.xlu0 %v1797_v7 }
 0x747   : > { %1394 = vadd.xlane.f32.xlu0 %v1393_v56 }
 0x74b   : > { %1804 = vadd.xlane.f32.xlu0 %v1803_v49 }
 0x76d   : > { %v2152_v33 = vpop.xlane.xlu1 %2151 }
 0x76e   : > { %v2172_v55 = vsub.f32 %v4844_v39, %v2152_v33 }
 0x76f   : > { %v2149_v25 = vpop.xlane.xlu0 %2148 }
 0x770   : > { %v2181_v41 = vmul.f32 1.442695, %v2172_v55  ;;  %v2171_v50 = vsub.f32 %v4848_v5, %v2149_v25 }
 0x772   : > { %3939 = vpow2.f32 %v2181_v41  ;;  %v2179_v3 = vmul.f32 1.442695, %v2171_v50 }
 0x773   : > { %v2158_v10 = vpop.xlane.xlu0 %2157 }
 0x774   : > { %3941 = vpow2.f32 %v2179_v3  ;;  %v2174_v2 = vsub.f32 %v4852_v37, %v2158_v10 }
 0x775   : > { %v2164_v35 = vpop.xlane.xlu1 %2163 }
 0x776   : > { %v2185_v23 = vmul.f32 1.442695, %v2174_v2  ;;  %v2176_v36 = vsub.f32 %v4858_v30, %v2164_v35 }
 0x777   : > { %v2155_v6 = vpop.xlane.xlu0 %2154 }
 0x778   : > { %3943 = vpow2.f32 %v2185_v23  ;;  %v2189_v51 = vmul.f32 1.442695, %v2176_v36  ;;  %v2173_v20 = vsub.f32 %v4854_v1, %v2155_v6  ;;  %v968_v36 = vsel %vm916_vm4, %v4443_v14, 0.0 }
 0x779   : > { %v2170_v39 = vpop.xlane.xlu1 %2169  ;;  %v965_v6 = vsel %vm916_vm4, %v4441_v13, 0.0  ;;  %v977_v14 = vsel %vm916_vm4, %v4503_v45, 0.0  ;;  %v983_v13 = vsel %vm916_vm4, %v4519_v62, 0.0 }
 0x77a   : > { %3945 = vpow2.f32 %v2189_v51  ;;  %v2183_v38 = vmul.f32 1.442695, %v2173_v20  ;;  %v2178_v5 = vsub.f32 %v4866_v60, %v2170_v39  ;;  %v974_v51 = vsel %vm916_vm4, %v4499_v21, 0.0 }
 0x77b   : > { %v2161_v9 = vpop.xlane.xlu0 %2160  ;;  %v971_v20 = vsel %vm916_vm4, %v4495_v44, 0.0  ;;  %v980_v39 = vsel %vm916_vm4, %v4507_v47, 0.0 }
 0x77c   : > { %3947 = vpow2.f32 %v2183_v38  ;;  %v2193_v61 = vmul.f32 1.442695, %v2178_v5  ;;  %v2175_v58 = vsub.f32 %v4862_v57, %v2161_v9  ;;  %v986_v38 = vsel %vm916_vm4, %v4522_v63, 0.0 }
 0x77d   : > { %v2228_v49 = vpop.permute.xlu1 %2227 }
 0x77e   : > { %3949 = vpow2.f32 %v2193_v61  ;;  %v2187_v37 = vmul.f32 1.442695, %v2175_v58 }
 0x77f   : > { %v3940_v48 = vpop.eup %3939  ;;  %v2167_v59 = vpop.xlane.xlu0 %2166 }
 0x780   : > { %3951 = vpow2.f32 %v2187_v37  ;;  %v2177_v30 = vsub.f32 %v4872_v0, %v2167_v59  ;;  %v2198_v28 = vsel %vm916_vm4, %v3940_v48, 0.0 }
 0x781   : > { %v3942_v1 = vpop.eup %3941  ;;  %2199 = vadd.xlane.f32.xlu1 %v2198_v28 }
 0x782   : > { %v2191_v7 = vmul.f32 1.442695, %v2177_v30  ;;  %3756 = vmatprep.mubr.msk.f32.mxu1 %vm916_vm4, %v3942_v1  ;;  %v2195_v60 = vsel %vm916_vm4, %v3942_v1, 0.0 }
 0x783   : > { %2196 = vadd.xlane.f32.xlu0 %v2195_v60  ;;  %v2230_v56 = vpop.permute.xlu0 %2229 }
 0x784   : > { %3953 = vpow2.f32 %v2191_v7  ;;  %3752 = vmatprep.subr.mxu1 %v2230_v56 }
 0x785   : > { %v3944_v57 = vpop.eup %3943  ;;  %3753 = vmatpush3.msra.mxu1 %v2230_v56 }
 0x786   : > { %3754 = vmatprep.subr.mxu1 %v2228_v49  ;;  %v2204_v33 = vsel %vm916_vm4, %v3944_v57, 0.0 }
 0x787   : > { %v3946_v0 = vpop.eup %3945  ;;  %2205 = vadd.xlane.f32.xlu1 %v2204_v33  ;;  %3755 = vmatpush3.msra.mxu1 %v2228_v49 }
 0x788   : > { %3757 = vmatmul.mubr.msk.f32.vlgmr.msra.gmra.mxu1 %vm916_vm4, %v3940_v48  ;;  %v2210_v41 = vsel %vm916_vm4, %v3946_v0, 0.0 }
 0x789   : > { %v3948_v55 = vpop.eup %3947 }
 0x78a   : > { %3759 = vmatprep.mubr.msk.f32.mxu1 %vm916_vm4, %v3948_v55  ;;  %v2201_v25 = vsel %vm916_vm4, %v3948_v55, 0.0 }
 0x78b   : > { %v3950_v50 = vpop.eup %3949  ;;  %2202 = vadd.xlane.f32.xlu0 %v2201_v25  ;;  %2211 = vadd.xlane.f32.xlu1 %v2210_v41 }
 0x78c   : > { %3760 = vmatmul.mubr.msk.f32.gmra.mxu1 %vm916_vm4, %v3944_v57  ;;  %v2216_v2 = vsel %vm916_vm4, %v3950_v50, 0.0 }
 0x78d   : > { %v3952_v3 = vpop.eup %3951 }
 0x78e   : > { %3762 = vmatprep.mubr.msk.f32.mxu1 %vm916_vm4, %v3952_v3  ;;  %v2207_v10 = vsel %vm916_vm4, %v3952_v3, 0.0 }
 0x78f   : > { %2208 = vadd.xlane.f32.xlu0 %v2207_v10  ;;  %2217 = vadd.xlane.f32.xlu1 %v2216_v2 }
 0x790   : > { %3763 = vmatmul.mubr.msk.f32.gmra.mxu1 %vm916_vm4, %v3946_v0 }
 0x791   : > { %v3954_v35 = vpop.eup %3953 }
 0x792   : > { %3765 = vmatprep.mubr.msk.f32.mxu1 %vm916_vm4, %v3954_v35  ;;  %v2213_v23 = vsel %vm916_vm4, %v3954_v35, 0.0 }
 0x793   : > { %2214 = vadd.xlane.f32.xlu0 %v2213_v23  ;;  %969 = vadd.xlane.f32.xlu1 %v968_v36 }
 0x794   : > { %3766 = vmatmul.mubr.msk.f32.gmra.mxu1 %vm916_vm4, %v3950_v50 }
 0x797   : > { %966 = vadd.xlane.f32.xlu0 %v965_v6  ;;  %975 = vadd.xlane.f32.xlu1 %v974_v51 }
 0x79b   : > { %972 = vadd.xlane.f32.xlu0 %v971_v20  ;;  %981 = vadd.xlane.f32.xlu1 %v980_v39 }
 0x79f   : > { %978 = vadd.xlane.f32.xlu0 %v977_v14  ;;  %987 = vadd.xlane.f32.xlu1 %v986_v38 }
 0x7a3   : > { %984 = vadd.xlane.f32.xlu0 %v983_v13 }
 0x7ae   : > { %v1380_v21 = vpop.xlane.xlu1 %1379 }
 0x7af   : > { %3955 = vrcp.f32 %v1380_v21  ;;  %v2528_v21 = vld [vmem:[%s5250_s5 + $0x10] sm:$0xff] }
 0x7b2   : > { %v1386_v44 = vpop.xlane.xlu1 %1385 }
 0x7b4   : > { %v1377_v5 = vpop.xlane.xlu0 %1376 }
 0x7b5   : > { %3957 = vrcp.f32 %v1377_v5 }
 0x7b6   : > { %v1796_v47 = vpop.xlane.xlu1 %1795 }
 0x7b8   : > { %v1787_v9 = vpop.xlane.xlu0 %1786 }
 0x7b9   : > { %3959 = vrcp.f32 %v1787_v9 }
 0x7ba   : > { %v1392_v63 = vpop.xlane.xlu1 %1391 }
 0x7bc   : > { %v3956_v61 = vpop.eup %3955  ;;  %v1790_v58 = vpop.xlane.xlu0 %1789 }
 0x7bd   : > { %3961 = vrcp.f32 %v1790_v58  ;;  %v1561_v45 = vmul.f32 %v3956_v61, %v4812_v22 }
 0x7be   : > { %3963 = vrcp.f32 %v1386_v44  ;;  %v1802_v59 = vpop.xlane.xlu1 %1801 }
 0x7bf   : > { %2398 = vrot.lane.b32.xlu1 %v1561_v45, %s4073_s29 }
 0x7c0   : > { %v1383_v62 = vpop.xlane.xlu0 %1382 }
 0x7c1   : > { %3965 = vrcp.f32 %v1383_v62 }
 0x7c2   : > { %v3958_v37 = vpop.eup %3957  ;;  %3967 = vrcp.f32 %v1796_v47  ;;  %v1398_v60 = vpop.xlane.xlu1 %1397  ;;  %v2526_v47 = vld [vmem:[%s5250_s5] sm:$0xff] }
 0x7c3   : > { %v1560_v48 = vmul.f32 %v3958_v37, %v4814_v42 }
 0x7c4   : > { %v1793_v30 = vpop.xlane.xlu0 %1792 }
 0x7c5   : > { %3969 = vrcp.f32 %v1793_v30  ;;  %2396 = vrot.lane.b32.xlu0 %v1560_v48, %s4073_s29 }
 0x7c6   : > { %v3960_v28 = vpop.eup %3959  ;;  %3971 = vrcp.f32 %v1392_v63  ;;  %v1808_v55 = vpop.xlane.xlu1 %1807 }
 0x7c7   : > { %v1970_v22 = vmul.f32 %v3960_v28, %v4830_v16 }
 0x7c8   : > { %v1389_v1 = vpop.xlane.xlu0 %1388 }
 0x7c9   : > { %3973 = vrcp.f32 %v1389_v1  ;;  %2428 = vrot.lane.b32.xlu1 %v1970_v22, %s4074_s14 }
 0x7ca   : > { %v3962_v7 = vpop.eup %3961  ;;  %3975 = vrcp.f32 %v1802_v59 }
 0x7cb   : > { %v1971_v56 = vmul.f32 %v3962_v7, %v4828_v27  ;;  %v3964_v42 = vpop.eup %3963 }
 0x7cc   : > { %v1799_v57 = vpop.xlane.xlu0 %1798  ;;  %v1563_v16 = vmul.f32 %v3964_v42, %v4816_v46 }
 0x7cd   : > { %3977 = vrcp.f32 %v1799_v57  ;;  %2430 = vrot.lane.b32.xlu1 %v1971_v56, %s4074_s14 }
 0x7ce   : > { %v3966_v49 = vpop.eup %3965  ;;  %3979 = vrcp.f32 %v1398_v60 }
 0x7cf   : > { %v1562_v33 = vmul.f32 %v3966_v49, %v4818_v43  ;;  %v3968_v0 = vpop.eup %3967 }
 0x7d0   : > { %v1395_v25 = vpop.xlane.xlu0 %1394  ;;  %v1973_v50 = vmul.f32 %v3968_v0, %v4832_v8  ;;  %v2529_v8 = vld [vmem:[%s5250_s5 + $0x18] sm:$0xff] }
 0x7d1   : > { %3981 = vrcp.f32 %v1395_v25  ;;  %2400 = vrot.lane.b32.xlu0 %v1562_v33, %s4073_s29  ;;  %2402 = vrot.lane.b32.xlu1 %v1563_v16, %s4073_s29 }
 0x7d2   : > { %v3970_v27 = vpop.eup %3969  ;;  %3983 = vrcp.f32 %v1808_v55  ;;  %3768 = vmatprep.subr.mxu1 %v2529_v8 }
 0x7d3   : > { %v1972_v41 = vmul.f32 %v3970_v27, %v4834_v24  ;;  %v3972_v3 = vpop.eup %3971  ;;  %3769 = vmatpush3.msra.mxu1 %v2529_v8 }
 0x7d4   : > { %v1805_v10 = vpop.xlane.xlu0 %1804  ;;  %v1565_v2 = vmul.f32 %v3972_v3, %v4820_v11  ;;  %3770 = vmatprep.subr.mxu1 %v2528_v21 }
 0x7d5   : > { %3985 = vrcp.f32 %v1805_v10  ;;  %2432 = vrot.lane.b32.xlu0 %v1972_v41, %s4074_s14  ;;  %2434 = vrot.lane.b32.xlu1 %v1973_v50, %s4074_s14 }
 0x7d6   : > { %v3974_v46 = vpop.eup %3973  ;;  %3771 = vmatpush3.msra.mxu1 %v2528_v21 }
 0x7d7   : > { %v1564_v43 = vmul.f32 %v3974_v46, %v4822_v52  ;;  %v3976_v35 = vpop.eup %3975 }
 0x7d8   : > { %v1975_v36 = vmul.f32 %v3976_v35, %v4836_v54 }
 0x7d9   : > { %2404 = vrot.lane.b32.xlu0 %v1564_v43, %s4073_s29  ;;  %2406 = vrot.lane.b32.xlu1 %v1565_v2, %s4073_s29 }
 0x7da   : > { %v3978_v24 = vpop.eup %3977 }
 0x7db   : > { %v1974_v23 = vmul.f32 %v3978_v24, %v4838_v4  ;;  %v3980_v6 = vpop.eup %3979 }
 0x7dc   : > { %v1567_v51 = vmul.f32 %v3980_v6, %v4824_v40 }
 0x7dd   : > { %2436 = vrot.lane.b32.xlu0 %v1974_v23, %s4074_s14  ;;  %2438 = vrot.lane.b32.xlu1 %v1975_v36, %s4074_s14 }
 0x7de   : > { %v3982_v11 = vpop.eup %3981 }
 0x7df   : > { %v1566_v52 = vmul.f32 %v3982_v11, %v4826_v26  ;;  %v3984_v20 = vpop.eup %3983 }
 0x7e0   : > { %v1977_v54 = vmul.f32 %v3984_v20, %v4840_v29  ;;  %v2527_v29 = vld [vmem:[%s5250_s5 + $0x8] sm:$0xff] }
 0x7e1   : > { %2408 = vrot.lane.b32.xlu0 %v1566_v52, %s4073_s29  ;;  %2410 = vrot.lane.b32.xlu1 %v1567_v51, %s4073_s29 }
 0x7e2   : > { %v3986_v39 = vpop.eup %3985  ;;  %3772 = vmatprep.subr.mxu1 %v2527_v29 }
 0x7e3   : > { %v1976_v4 = vmul.f32 %v3986_v39, %v4842_v53  ;;  %3773 = vmatpush3.msra.mxu1 %v2527_v29 }
 0x7e4   : > { %3774 = vmatprep.subr.mxu1 %v2526_v47 }
 0x7e5   : > { %2440 = vrot.lane.b32.xlu0 %v1976_v4, %s4074_s14  ;;  %2442 = vrot.lane.b32.xlu1 %v1977_v54, %s4074_s14 }
 0x7e6   : > { %3775 = vmatpush3.msra.mxu1 %v2526_v47 }
 0x80a   : > { %v2200_v14 = vpop.xlane.xlu1 %2199 }
 0x80b   : > { %3987 = vrcp.f32 %v2200_v14 }
 0x80c   : > { %v2197_v38 = vpop.xlane.xlu0 %2196 }
 0x80d   : > { %3989 = vrcp.f32 %v2197_v38 }
 0x810   : > { %v2206_v13 = vpop.xlane.xlu1 %2205 }
 0x811   : > { %3991 = vrcp.f32 %v2206_v13 }
 0x814   : > { %v2203_v26 = vpop.xlane.xlu0 %2202  ;;  %v2212_v40 = vpop.xlane.xlu1 %2211 }
 0x815   : > { %3993 = vrcp.f32 %v2203_v26 }
 0x816   : > { %3995 = vrcp.f32 %v2212_v40 }
 0x818   : > { %v2209_v44 = vpop.xlane.xlu0 %2208  ;;  %v2218_v53 = vpop.xlane.xlu1 %2217 }
 0x819   : > { %3997 = vrcp.f32 %v2209_v44  ;;  %v3988_v9 = vpop.eup %3987 }
 0x81a   : > { %3999 = vrcp.f32 %v2218_v53  ;;  %v3990_v45 = vpop.eup %3989 }
 0x81c   : > { %v2215_v5 = vpop.xlane.xlu0 %2214  ;;  %v970_v27 = vpop.xlane.xlu1 %969 }
 0x81d   : > { %4001 = vrcp.f32 %v2215_v5 }
 0x81e   : > { %v3992_v37 = vpop.eup %3991  ;;  %4003 = vrcp.f32 %v970_v27 }
 0x820   : > { %v976_v41 = vpop.xlane.xlu1 %975  ;;  %v967_v3 = vpop.xlane.xlu0 %966 }
 0x821   : > { %4005 = vrcp.f32 %v967_v3 }
 0x822   : > { %v3994_v30 = vpop.eup %3993  ;;  %4007 = vrcp.f32 %v976_v41 }
 0x823   : > { %v3996_v1 = vpop.eup %3995 }
 0x824   : > { %v982_v50 = vpop.xlane.xlu1 %981  ;;  %v973_v46 = vpop.xlane.xlu0 %972 }
 0x825   : > { %4009 = vrcp.f32 %v973_v46 }
 0x826   : > { %v3998_v56 = vpop.eup %3997  ;;  %4011 = vrcp.f32 %v982_v50 }
 0x827   : > { %v4000_v49 = vpop.eup %3999 }
 0x828   : > { %v988_v10 = vpop.xlane.xlu1 %987  ;;  %v979_v2 = vpop.xlane.xlu0 %978 }
 0x829   : > { %4013 = vrcp.f32 %v979_v2 }
 0x82a   : > { %v4002_v0 = vpop.eup %4001  ;;  %4015 = vrcp.f32 %v988_v10 }
 0x82b   : > { %v4004_v38 = vpop.eup %4003 }
 0x82c   : > { %v985_v8 = vpop.xlane.xlu0 %984  ;;  %v1151_v40 = vmul.f32 %v4004_v38, %v4548_v12 }
 0x82d   : > { %4017 = vrcp.f32 %v985_v8 }
 0x82e   : > { %v4006_v13 = vpop.eup %4005 }
 0x82f   : > { %v4008_v21 = vpop.eup %4007  ;;  %v1150_v53 = vmul.f32 %v4006_v13, %v4550_v15 }
 0x831   : > { %v2399_v43 = vpop.permute.xlu1 %2398 }
 0x832   : > { %v2485_v29 = vsel %vm778_vm3, %v1151_v40, %v2399_v43  ;;  %v4010_v5 = vpop.eup %4009  ;;  %v2669_v40 = vld [vmem:[%s4162_s30 + $0x18] sm:$0xff] }
 0x837   : > { %v2397_v23 = vpop.permute.xlu0 %2396 }
 0x83b   : > { %v2429_v35 = vpop.permute.xlu1 %2428 }
 0x83f   : > { %v2431_v24 = vpop.permute.xlu1 %2430 }
 0x840   : > { %v2494_v47 = vsel %vm2492_vm6, %v2485_v29, %v2431_v24 }
 0x843   : > { %v2403_v36 = vpop.permute.xlu1 %2402  ;;  %v2401_v6 = vpop.permute.xlu0 %2400 }
 0x847   : > { %v2435_v11 = vpop.permute.xlu1 %2434  ;;  %v2433_v52 = vpop.permute.xlu0 %2432 }
 0x848   : > { %v3758_v61 = vpop.f32.mrf.mxu1 }
 0x849   : > { %v2381_v58 = vmul.f32 %v3988_v9, %v3758_v61  ;;  %v2484_v61 = vsel %vm778_vm3, %v1150_v53, %v2397_v23 }
 0x84a   : > { %v2341_v63 = vpop.f32.mrf.mxu1  ;;  %v2493_v12 = vsel %vm2492_vm6, %v2484_v61, %v2429_v35  ;;  %v2668_v61 = vld [vmem:[%s4162_s30 + $0x10] sm:$0xff] }
 0x84b   : > { %v2380_v62 = vmul.f32 %v3990_v45, %v2341_v63  ;;  %2462 = vrot.lane.b32.xlu1 %v2381_v58, %s4075_s23  ;;  %v2407_v51 = vpop.permute.xlu1 %2406  ;;  %v2405_v20 = vpop.permute.xlu0 %2404  ;;  %v1153_v58 = vmul.f32 %v4008_v21, %v4552_v17 }
 0x84c   : > { %v3761_v48 = vpop.f32.mrf.mxu1  ;;  %v4012_v63 = vpop.eup %4011 }
 0x84d   : > { %v2383_v59 = vmul.f32 %v3992_v37, %v3761_v48  ;;  %2460 = vrot.lane.b32.xlu0 %v2380_v62, %s4075_s23  ;;  %v1152_v37 = vmul.f32 %v4010_v5, %v4554_v18  ;;  %v2487_v15 = vsel %vm778_vm3, %v1153_v58, %v2403_v36 }
 0x84e   : > { %v2351_v28 = vpop.f32.mrf.mxu1 }
 0x84f   : > { %v2382_v22 = vmul.f32 %v3994_v30, %v2351_v28  ;;  %2466 = vrot.lane.b32.xlu1 %v2383_v59, %s4075_s23  ;;  %v2439_v39 = vpop.permute.xlu1 %2438  ;;  %v2437_v4 = vpop.permute.xlu0 %2436  ;;  %v2496_v30 = vsel %vm2492_vm6, %v2487_v15, %v2435_v11  ;;  %v2486_v28 = vsel %vm778_vm3, %v1152_v37, %v2401_v6 }
 0x850   : > { %v3764_v7 = vpop.f32.mrf.mxu1  ;;  %v4014_v59 = vpop.eup %4013 }
 0x851   : > { %v2385_v60 = vmul.f32 %v3996_v1, %v3764_v7  ;;  %2464 = vrot.lane.b32.xlu0 %v2382_v22, %s4075_s23  ;;  %v1155_v22 = vmul.f32 %v4012_v63, %v4556_v19  ;;  %v4016_v7 = vpop.eup %4015 }
 0x852   : > { %v2361_v42 = vpop.f32.mrf.mxu1 }
 0x853   : > { %v2384_v57 = vmul.f32 %v3998_v56, %v2361_v42  ;;  %2470 = vrot.lane.b32.xlu1 %v2385_v60, %s4075_s23  ;;  %v2411_v54 = vpop.permute.xlu1 %2410  ;;  %v2409_v14 = vpop.permute.xlu0 %2408  ;;  %v2495_v60 = vsel %vm2492_vm6, %v2486_v28, %v2433_v52  ;;  %v1154_v56 = vmul.f32 %v4014_v59, %v4558_v31  ;;  %v2489_v42 = vsel %vm778_vm3, %v1155_v22, %v2407_v51  ;;  %v3311_v51 = vld [vmem:[%s5251_s6] ss:$0 sm:$0xff] }
 0x854   : > { %v3767_v33 = vpop.f32.mrf.mxu1  ;;  %v2670_v59 = vld [vmem:[%s4162_s30 + $0x20] sm:$0xff] }
 0x855   : > { %v2387_v16 = vmul.f32 %v4000_v49, %v3767_v33  ;;  %2468 = vrot.lane.b32.xlu0 %v2384_v57, %s4075_s23  ;;  %v4018_v49 = vpop.eup %4017  ;;  %v2498_v33 = vsel %vm2492_vm6, %v2489_v42, %v2439_v39  ;;  %v2667_v39 = vld [vmem:[%s4162_s30 + $0x8] sm:$0xff]  ;;  %v2672_v42 = vld [vmem:[%s4162_s30 + $0x30] sm:$0xff] }
 0x856   : > { %v2371_v55 = vpop.f32.mrf.mxu1  ;;  %v1156_v27 = vmul.f32 %v4018_v49, %v4564_v34 }
 0x857   : > { %v2386_v25 = vmul.f32 %v4002_v0, %v2371_v55  ;;  %2474 = vrot.lane.b32.xlu1 %v2387_v16, %s4075_s23  ;;  %v2443_v26 = vpop.permute.xlu1 %2442  ;;  %v2441_v44 = vpop.permute.xlu0 %2440  ;;  %v2488_v16 = vsel %vm778_vm3, %v1154_v56, %v2405_v20  ;;  %v1157_v0 = vmul.f32 %v4016_v7, %v4560_v32 }
 0x858   : > { %v2490_v43 = vsel %vm778_vm3, %v1156_v27, %v2409_v14  ;;  %v2666_v14 = vld [vmem:[%s4162_s30] sm:$0xff] }
 0x859   : > { %2472 = vrot.lane.b32.xlu0 %v2386_v25, %s4075_s23  ;;  %v2497_v25 = vsel %vm2492_vm6, %v2488_v16, %v2437_v4  ;;  %v2491_v41 = vsel %vm778_vm3, %v1157_v0, %v2411_v54  ;;  %v2499_v34 = vsel %vm2492_vm6, %v2490_v43, %v2441_v44 }
 0x85a   : > { %v2500_v10 = vsel %vm2492_vm6, %v2491_v41, %v2443_v26 }
 0x8bd   : > { %v2463_v9 = vpop.permute.xlu1 %2462 }
 0x8be   : > { %v2503_v45 = vsel %vm2501_vm5, %v2494_v47, %v2463_v9 }
 0x8bf   : > { %2511 = vst.msk [vmem:[#allocation3 + $0x8] sm:$0xff] %vm451_vm0, %v2503_v45  ;;  %v2461_v62 = vpop.permute.xlu0 %2460  ;;  %v2671_v45 = vld [vmem:[%s4162_s30 + $0x28] sm:$0xff] }
 0x8c0   : > { %v2502_v48 = vsel %vm2501_vm5, %v2493_v12, %v2461_v62 }
 0x8c1   : > { %2510 = vst.msk [vmem:[#allocation3] sm:$0xff] %vm451_vm0, %v2502_v48  ;;  %v2467_v17 = vpop.permute.xlu1 %2466 }
 0x8c2   : > { %v2505_v1 = vsel %vm2501_vm5, %v2496_v30, %v2467_v17  ;;  %v2673_v17 = vld [vmem:[%s4162_s30 + $0x38] sm:$0xff] }
 0x8c3   : > { %2513 = vst.msk [vmem:[#allocation3 + $0x18] sm:$0xff] %vm451_vm0, %v2505_v1  ;;  %v2465_v18 = vpop.permute.xlu0 %2464 }
 0x8c4   : > { %v2504_v57 = vsel %vm2501_vm5, %v2495_v60, %v2465_v18 }
 0x8c5   : > { %2512 = vst.msk [vmem:[#allocation3 + $0x10] sm:$0xff] %vm451_vm0, %v2504_v57  ;;  %v2471_v19 = vpop.permute.xlu1 %2470 }
 0x8c6   : > { %v2507_v55 = vsel %vm2501_vm5, %v2498_v33, %v2471_v19  ;;  %v2519_v46 = vld [vmem:[#allocation3 + $0x8] sm:$0xff] }
 0x8c7   : > { %2515 = vst.msk [vmem:[#allocation3 + $0x28] sm:$0xff] %vm451_vm0, %v2507_v55  ;;  %v2469_v31 = vpop.permute.xlu0 %2468 }
 0x8c8   : > { %v2506_v50 = vsel %vm2501_vm5, %v2497_v25, %v2469_v31  ;;  %v2518_v3 = vld [vmem:[#allocation3] sm:$0xff] }
 0x8c9   : > { %2514 = vst.msk [vmem:[#allocation3 + $0x20] sm:$0xff] %vm451_vm0, %v2506_v50  ;;  %3776 = vmatprep.mubr.msk.f32.mxu1 %vm451_vm0, %v2518_v3  ;;  %v2475_v32 = vpop.permute.xlu1 %2474 }
 0x8ca   : > { %v2509_v2 = vsel %vm2501_vm5, %v2500_v10, %v2475_v32  ;;  %3777 = vmatmul.mubr.msk.f32.vlgmr.msra.gmra.mxu1 %vm451_vm0, %v2519_v46  ;;  %v2521_v23 = vld [vmem:[#allocation3 + $0x18] sm:$0xff] }
 0x8cb   : > { %2517 = vst.msk [vmem:[#allocation3 + $0x38] sm:$0xff] %vm451_vm0, %v2509_v2  ;;  %v2473_v35 = vpop.permute.xlu0 %2472 }
 0x8cc   : > { %v2508_v8 = vsel %vm2501_vm5, %v2499_v34, %v2473_v35  ;;  %v2520_v24 = vld [vmem:[#allocation3 + $0x10] sm:$0xff] }
 0x8cd   : > { %2516 = vst.msk [vmem:[#allocation3 + $0x30] sm:$0xff] %vm451_vm0, %v2508_v8  ;;  %3779 = vmatprep.mubr.msk.f32.mxu1 %vm451_vm0, %v2520_v24 }
 0x8ce   : > { %3780 = vmatmul.mubr.msk.f32.gmra.mxu1 %vm451_vm0, %v2521_v23  ;;  %v2523_v6 = vld [vmem:[#allocation3 + $0x28] sm:$0xff] }
 0x8d0   : > { %v2522_v36 = vld [vmem:[#allocation3 + $0x20] sm:$0xff] }
 0x8d1   : > { %3782 = vmatprep.mubr.msk.f32.mxu1 %vm451_vm0, %v2522_v36 }
 0x8d2   : > { %3783 = vmatmul.mubr.msk.f32.gmra.mxu1 %vm451_vm0, %v2523_v6  ;;  %v2525_v52 = vld [vmem:[#allocation3 + $0x38] sm:$0xff] }
 0x8d4   : > { %v2524_v11 = vld [vmem:[#allocation3 + $0x30] sm:$0xff] }
 0x8d5   : > { %3785 = vmatprep.mubr.msk.f32.mxu1 %vm451_vm0, %v2524_v11 }
 0x8d6   : > { %3786 = vmatmul.mubr.msk.f32.gmra.mxu1 %vm451_vm0, %v2525_v52 }
 0x98a   : > { %v3778_v20 = vpop.f32.mrf.mxu1 }
 0x98b   : > { %v2633_v4 = vadd.f32 %v3778_v20, %v3311_v51 }
 0x98c   : > { %v2627_v54 = vpop.f32.mrf.mxu1 }
 0x98d   : > { %v5047_v38 = vadd.f32 %v2667_v39, %v2633_v4  ;;  %v2628_v13 = vadd.f32 %v3311_v51, %v2627_v54 }
 0x98e   : > { %v3781_v26 = vpop.f32.mrf.mxu1 }
 0x98f   : > { %v5050_v21 = vadd.f32 %v2666_v14, %v2628_v13  ;;  %v2643_v44 = vadd.f32 %v3781_v26, %v3311_v51  ;;  %v2687_v29 = vsel %vm451_vm0, %v5047_v38, 0.0 }
 0x990   : > { %2688 = vadd.xlane.f32.xlu1 %v2687_v29  ;;  %v2637_v53 = vpop.f32.mrf.mxu1 }
 0x991   : > { %v5054_v5 = vadd.f32 %v2669_v40, %v2643_v44  ;;  %v2638_v47 = vadd.f32 %v3311_v51, %v2637_v53  ;;  %v2684_v9 = vsel %vm451_vm0, %v5050_v21, 0.0 }
 0x992   : > { %2685 = vadd.xlane.f32.xlu0 %v2684_v9  ;;  %v3784_v58 = vpop.f32.mrf.mxu1 }
 0x993   : > { %v2653_v63 = vadd.f32 %v3784_v58, %v3311_v51  ;;  %v5060_v62 = vadd.f32 %v2668_v61, %v2638_v47  ;;  %v2693_v48 = vsel %vm451_vm0, %v5054_v5, 0.0 }
 0x994   : > { %v2647_v12 = vpop.f32.mrf.mxu1 }
 0x995   : > { %v5062_v37 = vadd.f32 %v2671_v45, %v2653_v63  ;;  %v2648_v15 = vadd.f32 %v3311_v51, %v2647_v12  ;;  %v2690_v56 = vsel %vm451_vm0, %v5060_v62, 0.0  ;;  %v2819_v63 = vld [vmem:[%s5254_s9 + $0x18] sm:$0xff]  ;;  %v2818_v12 = vld [vmem:[%s5254_s9 + $0x10] sm:$0xff] }
 0x996   : > { %2694 = vadd.xlane.f32.xlu0 %v2693_v48  ;;  %v3787_v30 = vpop.f32.mrf.mxu1  ;;  %3788 = vmatprep.subr.mxu0 %v2819_v63  ;;  %v2816_v48 = vld [vmem:[%s5254_s9] sm:$0xff] }
 0x997   : > { %v2663_v28 = vadd.f32 %v3787_v30, %v3311_v51  ;;  %v2699_v22 = vsel %vm451_vm0, %v5062_v37, 0.0  ;;  %v5070_v7 = vadd.f32 %v2670_v59, %v2648_v15  ;;  %3789 = vmatpush3.msra.mxu0 %v2819_v63  ;;  %v2817_v15 = vld [vmem:[%s5254_s9 + $0x8] sm:$0xff]  ;;  %v3011_v59 = vld [vmem:[%s5256_s11 + $0x78] sm:$0xff]  ;;  %v3010_v30 = vld [vmem:[%s5256_s11 + $0x70] sm:$0xff] }
 0x998   : > { %2700 = vadd.xlane.f32.xlu1 %v2699_v22  ;;  %v2657_v1 = vpop.f32.mrf.mxu1  ;;  %3790 = vmatprep.subr.mxu0 %v2818_v12 }
 0x999   : > { %v5072_v60 = vadd.f32 %v2673_v17, %v2663_v28  ;;  %v2658_v18 = vadd.f32 %v3311_v51, %v2657_v1  ;;  %v2696_v33 = vsel %vm451_vm0, %v5070_v7, 0.0  ;;  %3791 = vmatpush3.msra.mxu0 %v2818_v12  ;;  %3808 = vmatprep.subr.mxu1 %v3011_v59  ;;  %v3009_v17 = vld [vmem:[%s5256_s11 + $0x68] sm:$0xff] }
 0x99a   : > { %2691 = vadd.xlane.f32.xlu0 %v2690_v56  ;;  %3792 = vmatprep.subr.mxu0 %v2817_v15 }
 0x99b   : > { %v2705_v57 = vsel %vm451_vm0, %v5072_v60, 0.0  ;;  %v5079_v49 = vadd.f32 %v2672_v42, %v2658_v18  ;;  %3793 = vmatpush3.msra.mxu0 %v2817_v15  ;;  %3809 = vmatpush3.msra.mxu1 %v3011_v59 }
 0x99c   : > { %2706 = vadd.xlane.f32.xlu1 %v2705_v57  ;;  %3794 = vmatprep.subr.mxu0 %v2816_v48 }
 0x99d   : > { %v2702_v19 = vsel %vm451_vm0, %v5079_v49, 0.0  ;;  %3795 = vmatpush3.msra.mxu0 %v2816_v48  ;;  %3810 = vmatprep.subr.mxu1 %v3010_v30 }
 0x99e   : > { %2697 = vadd.xlane.f32.xlu0 %v2696_v33  ;;  %3811 = vmatpush3.msra.mxu1 %v3010_v30 }
 0x99f   : > { %3812 = vmatprep.subr.mxu1 %v3009_v17 }
 0x9a0   : > { %3813 = vmatpush3.msra.mxu1 %v3009_v17 }
 0x9a2   : > { %2703 = vadd.xlane.f32.xlu0 %v2702_v19 }
 0xa19   : > { %v2689_v16 = vpop.xlane.xlu1 %2688 }
 0xa1a   : > { %v2709_v0 = vmul.f32 0.03125, %v2689_v16 }
 0xa1b   : > { %v2686_v55 = vpop.xlane.xlu0 %2685 }
 0xa1c   : > { %v5086_v25 = vsub.f32 %v5047_v38, %v2709_v0  ;;  %v2708_v31 = vmul.f32 0.03125, %v2686_v55 }
 0xa1e   : > { %v5089_v27 = vsub.f32 %v5050_v21, %v2708_v31  ;;  %v2725_v41 = vmul.f32 %v5086_v25, %v5086_v25 }
 0xa1f   : > { %v2695_v50 = vpop.xlane.xlu0 %2694 }
 0xa20   : > { %v2711_v3 = vmul.f32 0.03125, %v2695_v50  ;;  %v2735_v10 = vsel %vm451_vm0, %v2725_v41, 0.0  ;;  %v2724_v32 = vmul.f32 %v5089_v27, %v5089_v27 }
 0xa21   : > { %2736 = vadd.xlane.f32.xlu1 %v2735_v10  ;;  %v2701_v46 = vpop.xlane.xlu1 %2700 }
 0xa22   : > { %v5097_v43 = vsub.f32 %v5054_v5, %v2711_v3  ;;  %v2713_v2 = vmul.f32 0.03125, %v2701_v46  ;;  %v2732_v34 = vsel %vm451_vm0, %v2724_v32, 0.0 }
 0xa23   : > { %v2692_v35 = vpop.xlane.xlu0 %2691  ;;  %2733 = vadd.xlane.f32.xlu0 %v2732_v34 }
 0xa24   : > { %v5101_v8 = vsub.f32 %v5062_v37, %v2713_v2  ;;  %v2710_v24 = vmul.f32 0.03125, %v2692_v35  ;;  %v2727_v23 = vmul.f32 %v5097_v43, %v5097_v43 }
 0xa25   : > { %v2707_v36 = vpop.xlane.xlu1 %2706 }
 0xa26   : > { %v5106_v6 = vsub.f32 %v5060_v62, %v2710_v24  ;;  %v2715_v11 = vmul.f32 0.03125, %v2707_v36  ;;  %v2741_v52 = vsel %vm451_vm0, %v2727_v23, 0.0  ;;  %v2729_v51 = vmul.f32 %v5101_v8, %v5101_v8  ;;  %v3320_v23 = vld [vmem:[%s5252_s7] ss:$0 sm:$0xff] }
 0xa27   : > { %v2698_v20 = vpop.xlane.xlu0 %2697  ;;  %2742 = vadd.xlane.f32.xlu1 %v2741_v52 }
 0xa28   : > { %v5112_v39 = vsub.f32 %v5072_v60, %v2715_v11  ;;  %v2712_v4 = vmul.f32 0.03125, %v2698_v20  ;;  %v2726_v54 = vmul.f32 %v5106_v6, %v5106_v6  ;;  %v2747_v26 = vsel %vm451_vm0, %v2729_v51, 0.0 }
 0xa2a   : > { %v5117_v14 = vsub.f32 %v5070_v7, %v2712_v4  ;;  %v2738_v13 = vsel %vm451_vm0, %v2726_v54, 0.0  ;;  %v2731_v40 = vmul.f32 %v5112_v39, %v5112_v39  ;;  %v3321_v54 = vld [vmem:[%s5253_s8] ss:$0 sm:$0xff] }
 0xa2b   : > { %2739 = vadd.xlane.f32.xlu0 %v2738_v13  ;;  %v2704_v44 = vpop.xlane.xlu0 %2703  ;;  %2748 = vadd.xlane.f32.xlu1 %v2747_v26 }
 0xa2c   : > { %v2714_v29 = vmul.f32 0.03125, %v2704_v44  ;;  %v2728_v53 = vmul.f32 %v5117_v14, %v5117_v14  ;;  %v2753_v61 = vsel %vm451_vm0, %v2731_v40, 0.0 }
 0xa2e   : > { %v5126_v47 = vsub.f32 %v5079_v49, %v2714_v29  ;;  %v2744_v9 = vsel %vm451_vm0, %v2728_v53, 0.0 }
 0xa2f   : > { %2745 = vadd.xlane.f32.xlu0 %v2744_v9  ;;  %2754 = vadd.xlane.f32.xlu1 %v2753_v61 }
 0xa30   : > { %v2730_v58 = vmul.f32 %v5126_v47, %v5126_v47 }
 0xa32   : > { %v2750_v45 = vsel %vm451_vm0, %v2730_v58, 0.0 }
 0xa33   : > { %2751 = vadd.xlane.f32.xlu0 %v2750_v45 }
 0xaaa   : > { %v2737_v28 = vpop.xlane.xlu1 %2736 }
 0xaab   : > { %v2757_v22 = vmul.f32 0.03125, %v2737_v28 }
 0xaac   : > { %v2734_v1 = vpop.xlane.xlu0 %2733 }
 0xaad   : > { %v2765_v18 = vadd.f32 1e-06, %v2757_v22  ;;  %v2756_v56 = vmul.f32 0.03125, %v2734_v1 }
 0xaaf   : > { %4019 = vrsqrt.f32 %v2765_v18  ;;  %v2764_v42 = vadd.f32 1e-06, %v2756_v56  ;;  %v3006_v56 = vld [vmem:[%s5256_s11 + $0x50] sm:$0xff] }
 0xab0   : > { %v2743_v57 = vpop.xlane.xlu1 %2742 }
 0xab1   : > { %4021 = vrsqrt.f32 %v2764_v42  ;;  %v2759_v33 = vmul.f32 0.03125, %v2743_v57  ;;  %v3005_v42 = vld [vmem:[%s5256_s11 + $0x48] sm:$0xff]  ;;  %v3004_v57 = vld [vmem:[%s5256_s11 + $0x40] sm:$0xff] }
 0xab3   : > { %v2767_v19 = vadd.f32 1e-06, %v2759_v33  ;;  %v3003_v33 = vld [vmem:[%s5256_s11 + $0x38] sm:$0xff] }
 0xab4   : > { %v2740_v16 = vpop.xlane.xlu0 %2739  ;;  %v2749_v0 = vpop.xlane.xlu1 %2748 }
 0xab5   : > { %4023 = vrsqrt.f32 %v2767_v19  ;;  %v2758_v55 = vmul.f32 0.03125, %v2740_v16  ;;  %v2761_v31 = vmul.f32 0.03125, %v2749_v0  ;;  %v3002_v19 = vld [vmem:[%s5256_s11 + $0x30] sm:$0xff]  ;;  %v3001_v16 = vld [vmem:[%s5256_s11 + $0x28] sm:$0xff]  ;;  %v3000_v0 = vld [vmem:[%s5256_s11 + $0x20] sm:$0xff] }
 0xab7   : > { %v2766_v41 = vadd.f32 1e-06, %v2758_v55  ;;  %v2769_v50 = vadd.f32 1e-06, %v2761_v31  ;;  %v2999_v55 = vld [vmem:[%s5256_s11 + $0x18] sm:$0xff]  ;;  %v2998_v31 = vld [vmem:[%s5256_s11 + $0x10] sm:$0xff] }
 0xab8   : > { %v2746_v3 = vpop.xlane.xlu0 %2745  ;;  %v2755_v10 = vpop.xlane.xlu1 %2754 }
 0xab9   : > { %4025 = vrsqrt.f32 %v2766_v41  ;;  %v2760_v32 = vmul.f32 0.03125, %v2746_v3  ;;  %v2763_v46 = vmul.f32 0.03125, %v2755_v10  ;;  %v2997_v41 = vld [vmem:[%s5256_s11 + $0x8] sm:$0xff]  ;;  %v3322_v3 = vld [vmem:[%s5255_s10] ss:$0 sm:$0xff] }
 0xaba   : > { %4027 = vrsqrt.f32 %v2769_v50  ;;  %v2996_v50 = vld [vmem:[%s5256_s11] sm:$0xff] }
 0xabb   : > { %v2768_v2 = vadd.f32 1e-06, %v2760_v32  ;;  %v2771_v34 = vadd.f32 1e-06, %v2763_v46 }
 0xabc   : > { %v4020_v35 = vpop.eup %4019  ;;  %v2752_v24 = vpop.xlane.xlu0 %2751 }
 0xabd   : > { %v2781_v36 = vmul.f32 %v4020_v35, %v5086_v25  ;;  %4029 = vrsqrt.f32 %v2768_v2  ;;  %v2762_v11 = vmul.f32 0.03125, %v2752_v24 }
 0xabe   : > { %v4022_v52 = vpop.eup %4021  ;;  %4031 = vrsqrt.f32 %v2771_v34 }
 0xabf   : > { %v2770_v51 = vadd.f32 1e-06, %v2762_v11  ;;  %v2780_v20 = vmul.f32 %v4022_v52, %v5089_v27  ;;  %v2795_v4 = vmul.f32 %v3320_v23, %v2781_v36 }
 0xac1   : > { %4033 = vrsqrt.f32 %v2770_v51  ;;  %v2794_v13 = vmul.f32 %v3320_v23, %v2780_v20  ;;  %v2809_v44 = vadd.f32 %v3321_v54, %v2795_v4 }
 0xac2   : > { %v4024_v26 = vpop.eup %4023 }
 0xac3   : > { %v2808_v40 = vadd.f32 %v3321_v54, %v2794_v13  ;;  %v2783_v29 = vmul.f32 %v4024_v26, %v5097_v43 }
 0xac5   : > { %3796 = vmatprep.mubr.msk.f32.mxu0 %vm451_vm0, %v2808_v40  ;;  %v2797_v9 = vmul.f32 %v3320_v23, %v2783_v29 }
 0xac6   : > { %v4026_v25 = vpop.eup %4025  ;;  %3797 = vmatmul.mubr.msk.f32.vlgmr.msra.gmra.mxu0 %vm451_vm0, %v2809_v44 }
 0xac7   : > { %v4028_v53 = vpop.eup %4027  ;;  %v2782_v27 = vmul.f32 %v4026_v25, %v5106_v6  ;;  %v2811_v48 = vadd.f32 %v3321_v54, %v2797_v9 }
 0xac8   : > { %v2785_v61 = vmul.f32 %v4028_v53, %v5101_v8 }
 0xac9   : > { %v2796_v58 = vmul.f32 %v3320_v23, %v2782_v27 }
 0xaca   : > { %v4030_v45 = vpop.eup %4029  ;;  %v2799_v59 = vmul.f32 %v3320_v23, %v2785_v61 }
 0xacb   : > { %v4032_v63 = vpop.eup %4031  ;;  %v2810_v12 = vadd.f32 %v3321_v54, %v2796_v58  ;;  %v2784_v15 = vmul.f32 %v4030_v45, %v5117_v14 }
 0xacc   : > { %v2787_v43 = vmul.f32 %v4032_v63, %v5112_v39  ;;  %v2813_v8 = vadd.f32 %v3321_v54, %v2799_v59  ;;  %v3008_v39 = vld [vmem:[%s5256_s11 + $0x60] sm:$0xff] }
 0xacd   : > { %3799 = vmatprep.mubr.msk.f32.mxu0 %vm451_vm0, %v2810_v12  ;;  %v2798_v30 = vmul.f32 %v3320_v23, %v2784_v15  ;;  %3814 = vmatprep.subr.mxu1 %v3008_v39 }
 0xace   : > { %v4034_v17 = vpop.eup %4033  ;;  %3800 = vmatmul.mubr.msk.f32.gmra.mxu0 %vm451_vm0, %v2811_v48  ;;  %v2801_v22 = vmul.f32 %v3320_v23, %v2787_v43  ;;  %3815 = vmatpush3.msra.mxu1 %v3008_v39 }
 0xacf   : > { %v2812_v6 = vadd.f32 %v3321_v54, %v2798_v30  ;;  %v2786_v28 = vmul.f32 %v4034_v17, %v5126_v47  ;;  %v3007_v47 = vld [vmem:[%s5256_s11 + $0x58] sm:$0xff] }
 0xad0   : > { %v2815_v18 = vadd.f32 %v3321_v54, %v2801_v22  ;;  %3816 = vmatprep.subr.mxu1 %v3007_v47 }
 0xad1   : > { %3802 = vmatprep.mubr.msk.f32.mxu0 %vm451_vm0, %v2812_v6  ;;  %v2800_v1 = vmul.f32 %v3320_v23, %v2786_v28  ;;  %3817 = vmatpush3.msra.mxu1 %v3007_v47 }
 0xad2   : > { %3803 = vmatmul.mubr.msk.f32.gmra.mxu0 %vm451_vm0, %v2813_v8  ;;  %3818 = vmatprep.subr.mxu1 %v3006_v56 }
 0xad3   : > { %v2814_v14 = vadd.f32 %v3321_v54, %v2800_v1  ;;  %3819 = vmatpush3.msra.mxu1 %v3006_v56 }
 0xad4   : > { %3820 = vmatprep.subr.mxu1 %v3005_v42 }
 0xad5   : > { %3805 = vmatprep.mubr.msk.f32.mxu0 %vm451_vm0, %v2814_v14  ;;  %3821 = vmatpush3.msra.mxu1 %v3005_v42 }
 0xad6   : > { %3806 = vmatmul.mubr.msk.f32.gmra.mxu0 %vm451_vm0, %v2815_v18  ;;  %3822 = vmatprep.subr.mxu1 %v3004_v57 }
 0xad7   : > { %3823 = vmatpush3.msra.mxu1 %v3004_v57 }
 0xad8   : > { %3824 = vmatprep.subr.mxu1 %v3003_v33 }
 0xad9   : > { %3825 = vmatpush3.msra.mxu1 %v3003_v33 }
 0xada   : > { %3826 = vmatprep.subr.mxu1 %v3002_v19 }
 0xadb   : > { %3827 = vmatpush3.msra.mxu1 %v3002_v19 }
 0xadc   : > { %3828 = vmatprep.subr.mxu1 %v3001_v16 }
 0xadd   : > { %3829 = vmatpush3.msra.mxu1 %v3001_v16 }
 0xade   : > { %3830 = vmatprep.subr.mxu1 %v3000_v0 }
 0xadf   : > { %3831 = vmatpush3.msra.mxu1 %v3000_v0 }
 0xae0   : > { %3832 = vmatprep.subr.mxu1 %v2999_v55 }
 0xae1   : > { %3833 = vmatpush3.msra.mxu1 %v2999_v55 }
 0xae2   : > { %3834 = vmatprep.subr.mxu1 %v2998_v31 }
 0xae3   : > { %3835 = vmatpush3.msra.mxu1 %v2998_v31 }
 0xae4   : > { %3836 = vmatprep.subr.mxu1 %v2997_v41 }
 0xae5   : > { %3837 = vmatpush3.msra.mxu1 %v2997_v41 }
 0xae6   : > { %3838 = vmatprep.subr.mxu1 %v2996_v50 }
 0xae7   : > { %3839 = vmatpush3.msra.mxu1 %v2996_v50 }
 0xb86   : > { %v3798_v10 = vpop.f32.mrf.mxu0 }
 0xb87   : > { %v2923_v32 = vadd.f32 %v3798_v10, %v3322_v3  ;;  %v3331_v10 = vld [vmem:[%s5257_s12] ss:$0 sm:$0xff] }
 0xb88   : > { %v2917_v46 = vpop.f32.mrf.mxu0 }
 0xb89   : > { %v2965_v2 = vmul.f32 0.70710677, %v2923_v32  ;;  %v2918_v34 = vadd.f32 %v3322_v3, %v2917_v46  ;;  %v2957_v12 = vmul.f32 0.5, %v2923_v32 }
 0xb8b   : > { %4035 = verf.f32 %v2965_v2  ;;  %v2964_v35 = vmul.f32 0.70710677, %v2918_v34  ;;  %v2956_v45 = vmul.f32 0.5, %v2918_v34 }
 0xb8d   : > { %4037 = verf.f32 %v2964_v35 }
 0xb8e   : > { %v3801_v24 = vpop.f32.mrf.mxu0 }
 0xb8f   : > { %v2933_v23 = vadd.f32 %v3801_v24, %v3322_v3 }
 0xb90   : > { %v2927_v36 = vpop.f32.mrf.mxu0 }
 0xb91   : > { %v2967_v11 = vmul.f32 0.70710677, %v2933_v23  ;;  %v2928_v52 = vadd.f32 %v3322_v3, %v2927_v36  ;;  %v2959_v22 = vmul.f32 0.5, %v2933_v23 }
 0xb92   : > { %v3804_v51 = vpop.f32.mrf.mxu0 }
 0xb93   : > { %4039 = verf.f32 %v2967_v11  ;;  %v2966_v20 = vmul.f32 0.70710677, %v2928_v52  ;;  %v2943_v4 = vadd.f32 %v3804_v51, %v3322_v3  ;;  %v2958_v6 = vmul.f32 0.5, %v2928_v52 }
 0xb94   : > { %v2937_v54 = vpop.f32.mrf.mxu0 }
 0xb95   : > { %4041 = verf.f32 %v2966_v20  ;;  %v2969_v13 = vmul.f32 0.70710677, %v2943_v4  ;;  %v2938_v26 = vadd.f32 %v3322_v3, %v2937_v54  ;;  %v2961_v57 = vmul.f32 0.5, %v2943_v4 }
 0xb96   : > { %v3807_v40 = vpop.f32.mrf.mxu0 }
 0xb97   : > { %4043 = verf.f32 %v2969_v13  ;;  %v2968_v44 = vmul.f32 0.70710677, %v2938_v26  ;;  %v2953_v29 = vadd.f32 %v3807_v40, %v3322_v3  ;;  %v2960_v47 = vmul.f32 0.5, %v2938_v26 }
 0xb98   : > { %v4036_v25 = vpop.eup %4035  ;;  %v2947_v53 = vpop.f32.mrf.mxu0 }
 0xb99   : > { %4045 = verf.f32 %v2968_v44  ;;  %v2971_v27 = vmul.f32 0.70710677, %v2953_v29  ;;  %v2981_v61 = vadd.f32 1.0, %v4036_v25  ;;  %v2948_v58 = vadd.f32 %v3322_v3, %v2947_v53 }
 0xb9a   : > { %v4038_v9 = vpop.eup %4037  ;;  %v2963_v41 = vmul.f32 0.5, %v2953_v29 }
 0xb9b   : > { %4047 = verf.f32 %v2971_v27  ;;  %v2980_v63 = vadd.f32 1.0, %v4038_v9  ;;  %v2970_v15 = vmul.f32 0.70710677, %v2948_v58  ;;  %v2989_v59 = vmul.f32 %v2981_v61, %v2957_v12 }
 0xb9c   : > { %v2962_v55 = vmul.f32 0.5, %v2948_v58 }
 0xb9d   : > { %v2988_v48 = vmul.f32 %v2980_v63, %v2956_v45  ;;  %4049 = verf.f32 %v2970_v15 }
 0xb9f   : > { %3840 = vmatprep.mubr.f32.mxu1 %v2988_v48 }
 0xba0   : > { %v4040_v43 = vpop.eup %4039  ;;  %3841 = vmatmul.mubr.f32.vlgmr.msra.gmra.mxu1 %v2989_v59 }
 0xba1   : > { %v2983_v17 = vadd.f32 1.0, %v4040_v43 }
 0xba2   : > { %v4042_v30 = vpop.eup %4041 }
 0xba3   : > { %v2982_v28 = vadd.f32 1.0, %v4042_v30  ;;  %v2991_v18 = vmul.f32 %v2983_v17, %v2959_v22 }
 0xba4   : > { %v4044_v8 = vpop.eup %4043 }
 0xba5   : > { %v2990_v1 = vmul.f32 %v2982_v28, %v2958_v6  ;;  %v2985_v39 = vadd.f32 1.0, %v4044_v8 }
 0xba6   : > { %v4046_v14 = vpop.eup %4045 }
 0xba7   : > { %3843 = vmatprep.mubr.f32.mxu1 %v2990_v1  ;;  %v2984_v56 = vadd.f32 1.0, %v4046_v14  ;;  %v2993_v19 = vmul.f32 %v2985_v39, %v2961_v57 }
 0xba8   : > { %v4048_v42 = vpop.eup %4047  ;;  %3844 = vmatmul.mubr.f32.gmra.mxu1 %v2991_v18 }
 0xba9   : > { %v2992_v33 = vmul.f32 %v2984_v56, %v2960_v47  ;;  %v2987_v0 = vadd.f32 1.0, %v4048_v42 }
 0xbaa   : > { %v4050_v16 = vpop.eup %4049 }
 0xbab   : > { %3846 = vmatprep.mubr.f32.mxu1 %v2992_v33  ;;  %v2986_v31 = vadd.f32 1.0, %v4050_v16  ;;  %v2995_v3 = vmul.f32 %v2987_v0, %v2963_v41 }
 0xbac   : > { %3847 = vmatmul.mubr.f32.gmra.mxu1 %v2993_v19 }
 0xbad   : > { %v2994_v50 = vmul.f32 %v2986_v31, %v2962_v55 }
 0xbaf   : > { %3849 = vmatprep.mubr.f32.mxu1 %v2994_v50 }
 0xbb0   : > { %3850 = vmatmul.mubr.f32.gmra.mxu1 %v2995_v3 }
 0xc60   : > { %v3842_v32 = vpop.f32.mrf.mxu1 }
 0xc61   : > { %v3091_v46 = vadd.f32 %v3842_v32, %v3331_v10 }
 0xc62   : > { %v3085_v2 = vpop.f32.mrf.mxu1 }
 0xc63   : > { %v3125_v34 = vadd.f32 %v3091_v46, %v5047_v38  ;;  %v3086_v35 = vadd.f32 %v3331_v10, %v3085_v2 }
 0xc65   : > { %3133 = vst.msk [vmem:[%s440_s20 + $0x8] sm:$0xff] %vm451_vm0, %v3125_v34  ;;  %v3124_v24 = vadd.f32 %v3086_v35, %v5050_v21 }
 0xc67   : > { %3132 = vst.msk [vmem:[%s440_s20] sm:$0xff] %vm451_vm0, %v3124_v24 }
 0xc68   : > { %v3845_v23 = vpop.f32.mrf.mxu1 }
 0xc69   : > { %v3101_v36 = vadd.f32 %v3845_v23, %v3331_v10 }
 0xc6a   : > { %v3095_v11 = vpop.f32.mrf.mxu1 }
 0xc6b   : > { %v3127_v52 = vadd.f32 %v3101_v36, %v5054_v5  ;;  %v3096_v51 = vadd.f32 %v3331_v10, %v3095_v11 }
 0xc6c   : > { %v3848_v20 = vpop.f32.mrf.mxu1 }
 0xc6d   : > { %3135 = vst.msk [vmem:[%s440_s20 + $0x18] sm:$0xff] %vm451_vm0, %v3127_v52  ;;  %v3126_v4 = vadd.f32 %v3096_v51, %v5060_v62  ;;  %v3111_v54 = vadd.f32 %v3848_v20, %v3331_v10 }
 0xc6e   : > { %v3105_v38 = vpop.f32.mrf.mxu1 }
 0xc6f   : > { %3134 = vst.msk [vmem:[%s440_s20 + $0x10] sm:$0xff] %vm451_vm0, %v3126_v4  ;;  %v3129_v13 = vadd.f32 %v3111_v54, %v5062_v37  ;;  %v3106_v21 = vadd.f32 %v3331_v10, %v3105_v38 }
 0xc70   : > { %v3851_v40 = vpop.f32.mrf.mxu1 }
 0xc71   : > { %3137 = vst.msk [vmem:[%s440_s20 + $0x28] sm:$0xff] %vm451_vm0, %v3129_v13  ;;  %v3128_v26 = vadd.f32 %v3106_v21, %v5070_v7  ;;  %v3121_v44 = vadd.f32 %v3851_v40, %v3331_v10 }
 0xc72   : > { %v3115_v5 = vpop.f32.mrf.mxu1 }
 0xc73   : > { %3136 = vst.msk [vmem:[%s440_s20 + $0x20] sm:$0xff] %vm451_vm0, %v3128_v26  ;;  %v3131_v29 = vadd.f32 %v3121_v44, %v5072_v60  ;;  %v3116_v25 = vadd.f32 %v3331_v10, %v3115_v5 }
 0xc75   : > { %3139 = vst.msk [vmem:[%s440_s20 + $0x38] sm:$0xff] %vm451_vm0, %v3131_v29  ;;  %v3130_v62 = vadd.f32 %v3116_v25, %v5079_v49 }
 0xc77   : > { %3138 = vst.msk [vmem:[%s440_s20 + $0x30] sm:$0xff] %vm451_vm0, %v3130_v62 }
 0xc78 PF: > { %s23_s25 = sadd.s32 1, %s4059_s25  }
 0xc79   : > { %p20_p4 = scmp.ge.s32.totalorder %s23_s25, 4  }
 0xc7b   :  { %22 = sbr.rel (!%p20_p4) target bundleno = 1 (0x1), region = 102 }

</bundles_post_ra>
